<compile_context>
chip_gen: v7x
topology: tpu7x:2x2x1
jax: 0.10.0
libtpu: 0.0.40
codegen_flags: <defaults>
</compile_context>

<pallas_src>
import functools

import jax
import jax.numpy as jnp
import numpy as np
from jax import lax
from jax.experimental import pallas as pl
from jax.experimental.pallas import tpu as pltpu


def mifnet_kernel(x_ref, w_ref, wc_ref, bc_ref, o_ref, *, seg_len):
    # x_ref : (1, in_planes, nbt)      bf16 -- bb batch elements packed on lanes
    # w_ref : (out_planes, in_planes)  bf16 -- fused front-end weight
    # wc_ref: (nc, out_planes, nbt)    bf16 -- pool-folded classifier, tiled x bb
    # bc_ref: (1, nc)                  f32  -- classifier bias (+ folded b_eff)
    # o_ref : (bb, nc)                 f32
    x = x_ref[0]

    # Fused front-end (sconv + BN1d + conv_encoder + BN2d, bias folded away).
    # TODO(synk): SS1D (self.TMamba) class definition is not provided in the
    # source module, so it is treated as identity (surrounding transposes
    # cancel); the pool->classifier fold below relies on that assumption.
    z = jnp.dot(w_ref[...], x, preferred_element_type=jnp.float32)   # (C, nbt) f32

    num_classes = wc_ref.shape[0]
    nbt = x.shape[-1]
    bb = o_ref.shape[0]

    # Classifier channel reduce on the VPU, one class at a time (caps live
    # vregs to ~2x the (C, nbt) working set instead of num_classes x).
    rows = []
    for n in range(num_classes):
        rows.append(jnp.sum(wc_ref[n].astype(jnp.float32) * z,
                            axis=0, keepdims=True))                   # (1, nbt)
    s = jnp.concatenate(rows, axis=0)                                  # (nc, nbt)

    # Per-batch-element time reduction: 0/1 segment matrix built in-kernel
    # (segT[b, k] == 1 iff lane k belongs to packed batch element b). No DMA,
    # no integer division -- just iota + compares on the VPU.
    b_idx = lax.broadcasted_iota(jnp.int32, (bb, nbt), 0)
    k_idx = lax.broadcasted_iota(jnp.int32, (bb, nbt), 1)
    segT = ((k_idx >= b_idx * seg_len) &
            (k_idx < (b_idx + 1) * seg_len)).astype(jnp.float32)       # (bb, nbt)

    logits = lax.dot_general(segT, s, (((1,), (1,)), ((), ())),
                             preferred_element_type=jnp.float32)       # (bb, nc)
    o_ref[...] = logits + bc_ref[...]


def fold_params(params):
    """Fold sconv+BN1d+conv_encoder+BN2d into W_eff, AvgPool1d into the
    classifier weights, and the front-end bias into the classifier bias.
    Exact algebra, computed once offline in HIGHEST precision."""
    (w1, s1, h1, w2, s2, h2, pool_mat, wc, bc) = params
    hi = jax.lax.Precision.HIGHEST
    radix = w1.shape[0]
    # Per group g:  W_eff_g = diag(s2) . w2[g] . diag(s1[g]) . w1[g]
    w_groups = [s2 * jnp.einsum('op,pc->oc', w2[g], s1[g] * w1[g], precision=hi)
                for g in range(radix)]
    w_eff = jnp.concatenate(w_groups, axis=1)                # (out_planes, in_planes)
    b_eff = s2 * sum(jnp.einsum('op,pz->oz', w2[g], h1[g], precision=hi)
                     for g in range(radix)) + h2             # (out_planes, 1)
    # AvgPool folded into classifier: wc_pool[n,c,t] = sum_w wc[n,c,w]*pool[t,w]
    wc_pool = jnp.einsum('ncw,tw->nct', wc, pool_mat, precision=hi)   # (nc, C, T)
    # Everything downstream of z is linear -> fold b_eff into the classifier bias.
    bc_fold = bc[:, 0] + jnp.einsum('nct,c->n', wc_pool, b_eff[:, 0], precision=hi)
    return w_eff, wc_pool, bc_fold                            # bc_fold: (nc,)


def _choose_bb(batch, seq_len, target_lanes=1024):
    """Largest batch-packing factor bb such that: bb divides B, bb*T <= target
    lanes, and the (bb, num_classes) output block is layout-legal
    (bb % 8 == 0 or bb == B). Prefer >=2 grid steps for v7x's two TensorCores."""
    def ok(d):
        return batch % d == 0 and (d % 8 == 0 or d == batch)
    cands = [d for d in range(1, batch + 1) if ok(d) and d * seq_len <= target_lanes]
    if not cands:
        return batch                      # single chunk; block == full output
    bb = max(cands)
    if batch // bb < 2:
        alt = [d for d in cands if batch // d >= 2 and d * seq_len >= 128]
        if alt:
            bb = max(alt)
    return bb


def prepare_mifnet(params, batch, seq_len, target_lanes=1024):
    """Parameter-only host work, done ONCE per parameter set / batch shape."""
    w_eff, wc_pool, bc_fold = fold_params(params)
    bb = _choose_bb(batch, seq_len, target_lanes)
    return {
        "seq_len": seq_len,
        "w_eff": w_eff.astype(jnp.bfloat16),                          # (C, in_planes)
        "wc_rep": jnp.tile(wc_pool, (1, 1, bb)).astype(jnp.bfloat16),  # (nc, C, bb*T)
        "bc_row": bc_fold.reshape(1, -1).astype(jnp.float32),          # (1, nc)
    }


def mifnet_forward(x, *, prep, single_buffer_constants=True):
    # x: (B, 1, in_planes, T) float32, as in PyTorch (before x.squeeze(dim=1)).
    B = x.shape[0]
    w_eff, wc_rep, bc_row = prep["w_eff"], prep["wc_rep"], prep["bc_row"]
    T = prep["seq_len"]
    in_planes = w_eff.shape[1]
    num_classes, _, nbt = wc_rep.shape
    bb = nbt // T
    if B % bb:
        raise ValueError(f"batch {B} not divisible by packing factor {bb}")
    n_chunks = B // bb

    # (B, in_planes, T) -> (n_chunks, in_planes, bb*T), lane index = b_local*T + t.
    xk = (x[:, 0].astype(jnp.bfloat16)
              .reshape(n_chunks, bb, in_planes, T)
              .transpose(0, 2, 1, 3)
              .reshape(n_chunks, in_planes, nbt))

    # Grid-constant operands: no double-buffering.
    const_kw = {"pipeline_mode": pl.Buffered(1)} if single_buffer_constants else {}
    kernel = functools.partial(mifnet_kernel, seg_len=T)

    return pl.pallas_call(
        kernel,
        out_shape=jax.ShapeDtypeStruct((B, num_classes), jnp.float32),
        grid_spec=pltpu.PrefetchScalarGridSpec(
            num_scalar_prefetch=0,
            grid=(n_chunks,),
            in_specs=[
                pl.BlockSpec((1, in_planes, nbt), lambda i: (i, 0, 0)),
                pl.BlockSpec(w_eff.shape, lambda i: (0, 0), **const_kw),
                pl.BlockSpec(wc_rep.shape, lambda i: (0, 0, 0), **const_kw),
                pl.BlockSpec(bc_row.shape, lambda i: (0, 0), **const_kw),
            ],
            out_specs=pl.BlockSpec((bb, num_classes), lambda i: (i, 0)),
        ),
        compiler_params=pltpu.CompilerParams(
            dimension_semantics=("parallel",)),
    )(xk, w_eff, wc_rep, bc_row)


def init_params(key, chans, out_planes, radix, T, pool_size, pool_stride, num_classes):
    """Raw per-module parameters (PyTorch layout), eval-mode BN statistics."""
    eps = 1e-5
    out_T = (T - pool_size) // pool_stride + 1
    k0, k1, k2 = jax.random.split(key, 3)

    def trunc(k, shape, std=0.01):
        return std * jax.random.truncated_normal(k, -2.0, 2.0, shape, jnp.float32)

    # sconv: Conv1d(chans*radix, out_planes*radix, 1, groups=radix, bias=False)
    w1 = trunc(k0, (radix, out_planes, chans))
    # BatchNorm1d(mid_planes), eval mode: gamma=1, beta=0, mean=0, var=1
    gamma1 = jnp.ones((radix, out_planes)); beta1 = jnp.zeros((radix, out_planes))
    rm1 = jnp.zeros((radix, out_planes));   rv1 = jnp.ones((radix, out_planes))
    s1 = (gamma1 / jnp.sqrt(rv1 + eps))[:, :, None]
    h1 = (beta1 - rm1 * gamma1 / jnp.sqrt(rv1 + eps))[:, :, None]

    # conv_encoder: Conv2d(out_planes, out_planes, (2,1), bias=True) + BN2d (eval)
    w_enc = trunc(k1, (out_planes, out_planes, 2, 1))
    b_enc = jnp.zeros((out_planes,))
    w2 = jnp.transpose(w_enc[:, :, :, 0], (2, 0, 1))          # (2, out_planes, out_planes)
    gamma2 = jnp.ones((out_planes,)); beta2 = jnp.zeros((out_planes,))
    rm2 = jnp.zeros((out_planes,));   rv2 = jnp.ones((out_planes,))
    s2v = gamma2 / jnp.sqrt(rv2 + eps)
    h2v = beta2 + s2v * (b_enc - rm2)                         # conv bias folded into shift
    s2 = s2v[:, None]; h2 = h2v[:, None]

    # AvgPool1d(pool_size, pool_stride) as a (T, out_T) matrix
    t_idx = jnp.arange(T)[:, None]
    w_idx = jnp.arange(out_T)[None, :]
    mask = (t_idx >= w_idx * pool_stride) & (t_idx < w_idx * pool_stride + pool_size)
    pool_mat = mask.astype(jnp.float32) / pool_size

    # LinearWithConstraint(out_planes*out_T, num_classes), renorm(p=2, dim=0, max=0.5)
    in_feat = out_planes * out_T
    w_cls = trunc(k2, (num_classes, in_feat))
    norms = jnp.sqrt(jnp.sum(w_cls * w_cls, axis=1, keepdims=True))
    w_cls = w_cls * jnp.where(norms > 0.5, 0.5 / norms, 1.0)
    b_cls = jnp.zeros((num_classes,))
    wc = w_cls.reshape(num_classes, out_planes, out_T)        # flatten(1) = (chan, time)
    bc = b_cls[:, None]

    return (w1, s1, h1, w2, s2, h2, pool_mat, wc, bc)


def mifnet_reference(x, params):
    # Pure-JAX, unfolded reference of the same forward (semantic sanity check).
    (w1, s1, h1, w2, s2, h2, pool_mat, wc, bc) = params
    hi = jax.lax.Precision.HIGHEST
    x = x[:, 0]                                               # (B, in_planes, T)
    chans = x.shape[1] // 2
    xa, xb = x[:, :chans], x[:, chans:]
    y1 = jnp.einsum('oc,bct->bot', w1[0], xa, precision=hi) * s1[0] + h1[0]
    y2 = jnp.einsum('oc,bct->bot', w1[1], xb, precision=hi) * s1[1] + h1[1]
    z = (jnp.einsum('oc,bct->bot', w2[0], y1, precision=hi)
         + jnp.einsum('oc,bct->bot', w2[1], y2, precision=hi))
    z = z * s2[None] + h2[None]
    pooled = jnp.einsum('bct,tw->bcw', z, pool_mat, precision=hi)
    logits = jnp.einsum('bcw,ncw->bn', pooled, wc, precision=hi) + bc[:, 0][None]
    return logits


if __name__ == "__main__":
    # chans=4, radix=2 -> in_planes=8; out_planes=32; T=64; B=16 so the kernel
    # packs bb=8 batch elements per grid step (nbt=512 lanes, 2 parallel steps).
    # AvgPool1d(16, 8) -> out_T=7; classifier in_features = 32*7 = 224; 4 classes.
    B, chans, radix, out_planes = 16, 4, 2, 32
    T, pool_size, pool_stride, num_classes = 64, 16, 8, 4
    in_planes = chans * radix

    key = jax.random.PRNGKey(0)
    kx, kp = jax.random.split(key)
    x = jax.random.normal(kx, (B, 1, in_planes, T), jnp.float32)
    params = init_params(kp, chans, out_planes, radix, T,
                         pool_size, pool_stride, num_classes)

    # One-time parameter folding / operand prep (hoisted out of the call path).
    prep = prepare_mifnet(params, B, T, target_lanes=1024)

    def run(single_buffer_constants):
        fn = jax.jit(functools.partial(
            mifnet_forward, prep=prep,
            single_buffer_constants=single_buffer_constants))
        return jax.block_until_ready(fn(x))

    try:
        out = run(True)
    except Exception:
        # Fallback if pipeline_mode=pl.Buffered(1) is rejected by this jax build.
        out = run(False)

    ref = mifnet_reference(x, params)
    assert out.shape == (B, num_classes)
    np.testing.assert_allclose(np.asarray(out), np.asarray(ref),
                               rtol=5e-2, atol=1e-5)
    print("KERNEL_OK")
</pallas_src>

<mosaic_0001>
module attributes {stable_mosaic.version = 11 : i64} {
  func.func @mifnet_kernel(%arg0: i32, %arg1: memref<1x8x512xbf16, #tpu.memory_space<vmem>>, %arg2: memref<32x8xbf16, #tpu.memory_space<vmem>>, %arg3: memref<4x32x512xbf16, #tpu.memory_space<vmem>>, %arg4: memref<1x4xf32, #tpu.memory_space<vmem>>, %arg5: memref<8x4xf32, #tpu.memory_space<vmem>>) attributes {dimension_semantics = [#tpu.dimension_semantics<parallel>], iteration_bounds = array<i64: 2>, scalar_prefetch = 0 : i64, scratch_operands = 0 : i64, tpu.core_type = #tpu.core_type<tc>, window_params = [{transform_indices = @transform_0, window_bounds = array<i64: 1, 8, 512>}, {pipeline_mode = #tpu.pipeline_mode<synchronous>, transform_indices = @transform_1, window_bounds = array<i64: 32, 8>}, {pipeline_mode = #tpu.pipeline_mode<synchronous>, transform_indices = @transform_2, window_bounds = array<i64: 4, 32, 512>}, {pipeline_mode = #tpu.pipeline_mode<synchronous>, transform_indices = @transform_3, window_bounds = array<i64: 1, 4>}, {transform_indices = @transform_4, window_bounds = array<i64: 8, 4>}]} {
    %c0 = arith.constant 0 : index
    %c0_0 = arith.constant 0 : index
    %c0_1 = arith.constant 0 : index
    %0 = vector.load %arg1[%c0, %c0_0, %c0_1] : memref<1x8x512xbf16, #tpu.memory_space<vmem>>, vector<1x8x512xbf16>
    %1 = vector.shape_cast %0 : vector<1x8x512xbf16> to vector<8x512xbf16>
    %c0_2 = arith.constant 0 : index
    %c0_3 = arith.constant 0 : index
    %2 = vector.load %arg2[%c0_2, %c0_3] : memref<32x8xbf16, #tpu.memory_space<vmem>>, vector<32x8xbf16>
    %cst = arith.constant dense<0.000000e+00> : vector<32x512xf32>
    %3 = tpu.matmul %2, %1, %cst {dimension_numbers = #tpu.dot_dimension_numbers<[1], [0], [0], [1], [0, 0, 1, 1], [], []>} : vector<32x8xbf16>, vector<8x512xbf16>, vector<32x512xf32> -> vector<32x512xf32>
    %c0_4 = arith.constant 0 : index
    %c0_5 = arith.constant 0 : index
    %c0_6 = arith.constant 0 : index
    %4 = vector.load %arg3[%c0_4, %c0_5, %c0_6] : memref<4x32x512xbf16, #tpu.memory_space<vmem>>, vector<1x32x512xbf16>
    %5 = vector.shape_cast %4 : vector<1x32x512xbf16> to vector<32x512xbf16>
    %6 = arith.extf %5 : vector<32x512xbf16> to vector<32x512xf32>
    %7 = arith.mulf %6, %3 : vector<32x512xf32>
    %cst_7 = arith.constant dense<0.000000e+00> : vector<512xf32>
    %8 = vector.multi_reduction <add>, %7, %cst_7 [0] : vector<32x512xf32> to vector<512xf32>
    %9 = vector.shape_cast %8 : vector<512xf32> to vector<1x512xf32>
    %c1 = arith.constant 1 : index
    %c0_8 = arith.constant 0 : index
    %c0_9 = arith.constant 0 : index
    %10 = vector.load %arg3[%c1, %c0_8, %c0_9] : memref<4x32x512xbf16, #tpu.memory_space<vmem>>, vector<1x32x512xbf16>
    %11 = vector.shape_cast %10 : vector<1x32x512xbf16> to vector<32x512xbf16>
    %12 = arith.extf %11 : vector<32x512xbf16> to vector<32x512xf32>
    %13 = arith.mulf %12, %3 : vector<32x512xf32>
    %cst_10 = arith.constant dense<0.000000e+00> : vector<512xf32>
    %14 = vector.multi_reduction <add>, %13, %cst_10 [0] : vector<32x512xf32> to vector<512xf32>
    %15 = vector.shape_cast %14 : vector<512xf32> to vector<1x512xf32>
    %c2 = arith.constant 2 : index
    %c0_11 = arith.constant 0 : index
    %c0_12 = arith.constant 0 : index
    %16 = vector.load %arg3[%c2, %c0_11, %c0_12] : memref<4x32x512xbf16, #tpu.memory_space<vmem>>, vector<1x32x512xbf16>
    %17 = vector.shape_cast %16 : vector<1x32x512xbf16> to vector<32x512xbf16>
    %18 = arith.extf %17 : vector<32x512xbf16> to vector<32x512xf32>
    %19 = arith.mulf %18, %3 : vector<32x512xf32>
    %cst_13 = arith.constant dense<0.000000e+00> : vector<512xf32>
    %20 = vector.multi_reduction <add>, %19, %cst_13 [0] : vector<32x512xf32> to vector<512xf32>
    %21 = vector.shape_cast %20 : vector<512xf32> to vector<1x512xf32>
    %c3 = arith.constant 3 : index
    %c0_14 = arith.constant 0 : index
    %c0_15 = arith.constant 0 : index
    %22 = vector.load %arg3[%c3, %c0_14, %c0_15] : memref<4x32x512xbf16, #tpu.memory_space<vmem>>, vector<1x32x512xbf16>
    %23 = vector.shape_cast %22 : vector<1x32x512xbf16> to vector<32x512xbf16>
    %24 = arith.extf %23 : vector<32x512xbf16> to vector<32x512xf32>
    %25 = arith.mulf %24, %3 : vector<32x512xf32>
    %cst_16 = arith.constant dense<0.000000e+00> : vector<512xf32>
    %26 = vector.multi_reduction <add>, %25, %cst_16 [0] : vector<32x512xf32> to vector<512xf32>
    %27 = vector.shape_cast %26 : vector<512xf32> to vector<1x512xf32>
    %28 = tpu.concatenate %9, %15, %21, %27 in 0 : vector<1x512xf32>, vector<1x512xf32>, vector<1x512xf32>, vector<1x512xf32> -> vector<4x512xf32>
    %29 = tpu.iota {dimensions = array<i32: 0>} : vector<8x512xi32>
    %30 = tpu.iota {dimensions = array<i32: 1>} : vector<8x512xi32>
    %c64_i32 = arith.constant 64 : i32
    %31 = vector.broadcast %c64_i32 : i32 to vector<8x512xi32>
    %32 = arith.muli %29, %31 : vector<8x512xi32>
    %33 = arith.cmpi sge, %30, %32 : vector<8x512xi32>
    %c1_i32 = arith.constant 1 : i32
    %34 = vector.broadcast %c1_i32 : i32 to vector<8x512xi32>
    %35 = arith.addi %29, %34 : vector<8x512xi32>
    %c64_i32_17 = arith.constant 64 : i32
    %36 = vector.broadcast %c64_i32_17 : i32 to vector<8x512xi32>
    %37 = arith.muli %35, %36 : vector<8x512xi32>
    %38 = arith.cmpi slt, %30, %37 : vector<8x512xi32>
    %39 = arith.andi %33, %38 : vector<8x512xi1>
    %40 = arith.extui %39 : vector<8x512xi1> to vector<8x512xi32>
    %41 = arith.sitofp %40 : vector<8x512xi32> to vector<8x512xf32>
    %cst_18 = arith.constant dense<0.000000e+00> : vector<8x4xf32>
    %42 = tpu.matmul %41, %28, %cst_18 {dimension_numbers = #tpu.dot_dimension_numbers<[1], [1], [0], [0], [0, 0, 1, 0], [], []>} : vector<8x512xf32>, vector<4x512xf32>, vector<8x4xf32> -> vector<8x4xf32>
    %c0_19 = arith.constant 0 : index
    %c0_20 = arith.constant 0 : index
    %43 = vector.load %arg4[%c0_19, %c0_20] : memref<1x4xf32, #tpu.memory_space<vmem>>, vector<1x4xf32>
    %44 = vector.broadcast %43 : vector<1x4xf32> to vector<8x4xf32>
    %45 = arith.addf %42, %44 : vector<8x4xf32>
    %c0_21 = arith.constant 0 : index
    %c0_22 = arith.constant 0 : index
    %46 = vector.load %arg5[%c0_21, %c0_22] : memref<8x4xf32, #tpu.memory_space<vmem>>, vector<8x4xf32>
    tpu.vector_store %arg5[%c0_21, %c0_22], %45 {strides = array<i32>} : memref<8x4xf32, #tpu.memory_space<vmem>>, vector<8x4xf32>,
    return
  }
  func.func @transform_0(%arg0: i32) -> (i32, i32, i32) {
    %c0_i32 = arith.constant 0 : i32
    %c0_i32_0 = arith.constant 0 : i32
    %c0_i32_1 = arith.constant 0 : i32
    return %arg0, %c0_i32, %c0_i32_0 : i32, i32, i32
  }
  func.func @transform_1(%arg0: i32) -> (i32, i32) {
    %c0_i32 = arith.constant 0 : i32
    %c0_i32_0 = arith.constant 0 : i32
    %c0_i32_1 = arith.constant 0 : i32
    return %c0_i32, %c0_i32_0 : i32, i32
  }
  func.func @transform_2(%arg0: i32) -> (i32, i32, i32) {
    %c0_i32 = arith.constant 0 : i32
    %c0_i32_0 = arith.constant 0 : i32
    %c0_i32_1 = arith.constant 0 : i32
    %c0_i32_2 = arith.constant 0 : i32
    return %c0_i32, %c0_i32_0, %c0_i32_1 : i32, i32, i32
  }
  func.func @transform_3(%arg0: i32) -> (i32, i32) {
    %c0_i32 = arith.constant 0 : i32
    %c0_i32_0 = arith.constant 0 : i32
    %c0_i32_1 = arith.constant 0 : i32
    return %c0_i32, %c0_i32_0 : i32, i32
  }
  func.func @transform_4(%arg0: i32) -> (i32, i32) {
    %c0_i32 = arith.constant 0 : i32
    %c0_i32_0 = arith.constant 0 : i32
    return %arg0, %c0_i32 : i32, i32
  }
}

module attributes {stable_mosaic.version = 11 : i64} {
  func.func @mifnet_kernel(%arg0: i32, %arg1: memref<1x8x512xbf16, #tpu.memory_space<vmem>>, %arg2: memref<32x8xbf16, #tpu.memory_space<vmem>>, %arg3: memref<4x32x512xbf16, #tpu.memory_space<vmem>>, %arg4: memref<1x4xf32, #tpu.memory_space<vmem>>, %arg5: memref<8x4xf32, #tpu.memory_space<vmem>>) attributes {dimension_semantics = [#tpu.dimension_semantics<parallel>], iteration_bounds = array<i64: 2>, scalar_prefetch = 0 : i64, scratch_operands = 0 : i64, tpu.core_type = #tpu.core_type<tc>, window_params = [{transform_indices = @transform_0, window_bounds = array<i64: 1, 8, 512>}, {pipeline_mode = #tpu.pipeline_mode<synchronous>, transform_indices = @transform_1, window_bounds = array<i64: 32, 8>}, {pipeline_mode = #tpu.pipeline_mode<synchronous>, transform_indices = @transform_2, window_bounds = array<i64: 4, 32, 512>}, {pipeline_mode = #tpu.pipeline_mode<synchronous>, transform_indices = @transform_3, window_bounds = array<i64: 1, 4>}, {transform_indices = @transform_4, window_bounds = array<i64: 8, 4>}]} {
    %c0 = arith.constant 0 : index
    %c0_0 = arith.constant 0 : index
    %c0_1 = arith.constant 0 : index
    %0 = vector.load %arg1[%c0, %c0_0, %c0_1] : memref<1x8x512xbf16, #tpu.memory_space<vmem>>, vector<1x8x512xbf16>
    %1 = vector.shape_cast %0 : vector<1x8x512xbf16> to vector<8x512xbf16>
    %c0_2 = arith.constant 0 : index
    %c0_3 = arith.constant 0 : index
    %2 = vector.load %arg2[%c0_2, %c0_3] : memref<32x8xbf16, #tpu.memory_space<vmem>>, vector<32x8xbf16>
    %cst = arith.constant dense<0.000000e+00> : vector<32x512xf32>
    %3 = tpu.matmul %2, %1, %cst {dimension_numbers = #tpu.dot_dimension_numbers<[1], [0], [0], [1], [0, 0, 1, 1], [], []>} : vector<32x8xbf16>, vector<8x512xbf16>, vector<32x512xf32> -> vector<32x512xf32>
    %c0_4 = arith.constant 0 : index
    %c0_5 = arith.constant 0 : index
    %c0_6 = arith.constant 0 : index
    %4 = vector.load %arg3[%c0_4, %c0_5, %c0_6] : memref<4x32x512xbf16, #tpu.memory_space<vmem>>, vector<1x32x512xbf16>
    %5 = vector.shape_cast %4 : vector<1x32x512xbf16> to vector<32x512xbf16>
    %6 = arith.extf %5 : vector<32x512xbf16> to vector<32x512xf32>
    %7 = arith.mulf %6, %3 : vector<32x512xf32>
    %cst_7 = arith.constant dense<0.000000e+00> : vector<512xf32>
    %8 = vector.multi_reduction <add>, %7, %cst_7 [0] : vector<32x512xf32> to vector<512xf32>
    %9 = vector.shape_cast %8 : vector<512xf32> to vector<1x512xf32>
    %c1 = arith.constant 1 : index
    %c0_8 = arith.constant 0 : index
    %c0_9 = arith.constant 0 : index
    %10 = vector.load %arg3[%c1, %c0_8, %c0_9] : memref<4x32x512xbf16, #tpu.memory_space<vmem>>, vector<1x32x512xbf16>
    %11 = vector.shape_cast %10 : vector<1x32x512xbf16> to vector<32x512xbf16>
    %12 = arith.extf %11 : vector<32x512xbf16> to vector<32x512xf32>
    %13 = arith.mulf %12, %3 : vector<32x512xf32>
    %cst_10 = arith.constant dense<0.000000e+00> : vector<512xf32>
    %14 = vector.multi_reduction <add>, %13, %cst_10 [0] : vector<32x512xf32> to vector<512xf32>
    %15 = vector.shape_cast %14 : vector<512xf32> to vector<1x512xf32>
    %c2 = arith.constant 2 : index
    %c0_11 = arith.constant 0 : index
    %c0_12 = arith.constant 0 : index
    %16 = vector.load %arg3[%c2, %c0_11, %c0_12] : memref<4x32x512xbf16, #tpu.memory_space<vmem>>, vector<1x32x512xbf16>
    %17 = vector.shape_cast %16 : vector<1x32x512xbf16> to vector<32x512xbf16>
    %18 = arith.extf %17 : vector<32x512xbf16> to vector<32x512xf32>
    %19 = arith.mulf %18, %3 : vector<32x512xf32>
    %cst_13 = arith.constant dense<0.000000e+00> : vector<512xf32>
    %20 = vector.multi_reduction <add>, %19, %cst_13 [0] : vector<32x512xf32> to vector<512xf32>
    %21 = vector.shape_cast %20 : vector<512xf32> to vector<1x512xf32>
    %c3 = arith.constant 3 : index
    %c0_14 = arith.constant 0 : index
    %c0_15 = arith.constant 0 : index
    %22 = vector.load %arg3[%c3, %c0_14, %c0_15] : memref<4x32x512xbf16, #tpu.memory_space<vmem>>, vector<1x32x512xbf16>
    %23 = vector.shape_cast %22 : vector<1x32x512xbf16> to vector<32x512xbf16>
    %24 = arith.extf %23 : vector<32x512xbf16> to vector<32x512xf32>
    %25 = arith.mulf %24, %3 : vector<32x512xf32>
    %cst_16 = arith.constant dense<0.000000e+00> : vector<512xf32>
    %26 = vector.multi_reduction <add>, %25, %cst_16 [0] : vector<32x512xf32> to vector<512xf32>
    %27 = vector.shape_cast %26 : vector<512xf32> to vector<1x512xf32>
    %28 = tpu.concatenate %9, %15, %21, %27 in 0 : vector<1x512xf32>, vector<1x512xf32>, vector<1x512xf32>, vector<1x512xf32> -> vector<4x512xf32>
    %29 = tpu.iota {dimensions = array<i32: 0>} : vector<8x512xi32>
    %30 = tpu.iota {dimensions = array<i32: 1>} : vector<8x512xi32>
    %c64_i32 = arith.constant 64 : i32
    %31 = vector.broadcast %c64_i32 : i32 to vector<8x512xi32>
    %32 = arith.muli %29, %31 : vector<8x512xi32>
    %33 = arith.cmpi sge, %30, %32 : vector<8x512xi32>
    %c1_i32 = arith.constant 1 : i32
    %34 = vector.broadcast %c1_i32 : i32 to vector<8x512xi32>
    %35 = arith.addi %29, %34 : vector<8x512xi32>
    %c64_i32_17 = arith.constant 64 : i32
    %36 = vector.broadcast %c64_i32_17 : i32 to vector<8x512xi32>
    %37 = arith.muli %35, %36 : vector<8x512xi32>
    %38 = arith.cmpi slt, %30, %37 : vector<8x512xi32>
    %39 = arith.andi %33, %38 : vector<8x512xi1>
    %40 = arith.extui %39 : vector<8x512xi1> to vector<8x512xi32>
    %41 = arith.sitofp %40 : vector<8x512xi32> to vector<8x512xf32>
    %cst_18 = arith.constant dense<0.000000e+00> : vector<8x4xf32>
    %42 = tpu.matmul %41, %28, %cst_18 {dimension_numbers = #tpu.dot_dimension_numbers<[1], [1], [0], [0], [0, 0, 1, 0], [], []>} : vector<8x512xf32>, vector<4x512xf32>, vector<8x4xf32> -> vector<8x4xf32>
    %c0_19 = arith.constant 0 : index
    %c0_20 = arith.constant 0 : index
    %43 = vector.load %arg4[%c0_19, %c0_20] : memref<1x4xf32, #tpu.memory_space<vmem>>, vector<1x4xf32>
    %44 = vector.broadcast %43 : vector<1x4xf32> to vector<8x4xf32>
    %45 = arith.addf %42, %44 : vector<8x4xf32>
    %c0_21 = arith.constant 0 : index
    %c0_22 = arith.constant 0 : index
    %46 = vector.load %arg5[%c0_21, %c0_22] : memref<8x4xf32, #tpu.memory_space<vmem>>, vector<8x4xf32>
    tpu.vector_store %arg5[%c0_21, %c0_22], %45 {strides = array<i32>} : memref<8x4xf32, #tpu.memory_space<vmem>>, vector<8x4xf32>,
    return
  }
  func.func @transform_0(%arg0: i32) -> (i32, i32, i32) {
    %c0_i32 = arith.constant 0 : i32
    %c0_i32_0 = arith.constant 0 : i32
    %c0_i32_1 = arith.constant 0 : i32
    return %arg0, %c0_i32, %c0_i32_0 : i32, i32, i32
  }
  func.func @transform_1(%arg0: i32) -> (i32, i32) {
    %c0_i32 = arith.constant 0 : i32
    %c0_i32_0 = arith.constant 0 : i32
    %c0_i32_1 = arith.constant 0 : i32
    return %c0_i32, %c0_i32_0 : i32, i32
  }
  func.func @transform_2(%arg0: i32) -> (i32, i32, i32) {
    %c0_i32 = arith.constant 0 : i32
    %c0_i32_0 = arith.constant 0 : i32
    %c0_i32_1 = arith.constant 0 : i32
    %c0_i32_2 = arith.constant 0 : i32
    return %c0_i32, %c0_i32_0, %c0_i32_1 : i32, i32, i32
  }
  func.func @transform_3(%arg0: i32) -> (i32, i32) {
    %c0_i32 = arith.constant 0 : i32
    %c0_i32_0 = arith.constant 0 : i32
    %c0_i32_1 = arith.constant 0 : i32
    return %c0_i32, %c0_i32_0 : i32, i32
  }
  func.func @transform_4(%arg0: i32) -> (i32, i32) {
    %c0_i32 = arith.constant 0 : i32
    %c0_i32_0 = arith.constant 0 : i32
    return %arg0, %c0_i32 : i32, i32
  }
}

</mosaic_0001>

<bundles_post_ra>
// kernel: mifnet_forward.1
= control target key start
LH: loop header
LB: loop body
LE: loop exit
PB: predicated region body
PF: predicated region fallthrough
CT: control target
= control target key end

     0   :  { %s1012_s15 = smov 0   ;;  %s1494_s0 = inlined_call_operand.vmem [shape: bf16[2,8,512], index: 0, kind: input, shape index: {}]   ;;  %s1495_s1 = inlined_call_operand.vmem [shape: bf16[32,8], index: 1, kind: input, shape index: {}]   ;;  %s1496_s2 = inlined_call_operand.vmem [shape: bf16[4,32,512], index: 2, kind: input, shape index: {}]   ;;  %s1497_s3 = inlined_call_operand.vmem [shape: f32[1,4], index: 3, kind: input, shape index: {}]   ;;  %s1498_s4 = inlined_call_operand.vmem [shape: f32[16,4], index: 4, kind: output, shape index: {}]  }
   0x1 LB: > { %s903_s16 = sadd.s32 4294967295, %s983_s15   ;;  %p907_p0 = scmp.ge.s32.totalorder %s983_s15, 1  ;;  %s983_s15 = sphi %s1012_s15, %s14_s15  }
   0x2   : > { %p162_p1 = scmp.lt.s32.totalorder %s983_s15, 3 }
   0x4   : > { %p163_p2 = pnand %p907_p0, %p162_p1 }
   0x6   : > { %166 = sbr.rel (%p163_p2) target bundleno = 525 (0x20d), region = 36 }
   0xd   : > { %p187_p3 = scmp.lt.s32.totalorder %s903_s16, 1  ;;  %v985_v0 = vmov 0   ;;  %vm230_vm0 = vcmask 1043456   ;;  %v975_v9 = vld [vmem:[%s1495_s1] sm:$0xff]   ;;  %vm223_vm1 = vcmask 64512   ;;  %v976_v10 = vld [vmem:[%s1495_s1 + $0x8] sm:$0xff]   ;;  %v671_v11 = vlaneseq }
   0xe   : > { %275 = vmatprep.mubr.bf16.mxu0 %v985_v0  ;;  %328 = vmatprep.mubr.bf16.mxu1 %v985_v0  ;;  %v1499_v20 = vmov 1.0   ;;  %v1511_v21 = vmov 0  ;;  %v1514_v22 = vmov 0  ;;  %v1045_v23 = vld [vmem:[%s1496_s2] sm:$0xff]  ;;  %v1065_v27 = vld [vmem:[%s1496_s2 + $0x8] sm:$0xff]  ;;  %v1089_v35 = vld [vmem:[%s1496_s2 + $0x10] sm:$0xff] }
   0xf   : > { %s1576_s16 = smov (!%p187_p3, %s903_s16), 1  ;;  %v672_v12 = vshrl.u32 %v671_v11, 7  ;;  %v674_v13 = vand.u32 127, %v671_v11  ;;  %v1050_v24 = vld [vmem:[%s1496_s2 + $0x40] sm:$0xff]  ;;  %v1070_v28 = vld [vmem:[%s1496_s2 + $0x48] sm:$0xff]  ;;  %v357_v31 = vunpack.c.l.bf16 %v1045_v23  ;;  %v1094_v36 = vld [vmem:[%s1496_s2 + $0x50] sm:$0xff]  ;;  %v359_v37 = vunpack.c.l.bf16 %v1065_v27 }
  0x10   : > { %s958_s17 = sshll.u32 %s1576_s16, 4  ;;  %v1055_v25 = vld [vmem:[%s1496_s2 + $0x80] sm:$0xff]  ;;  %v1075_v29 = vld [vmem:[%s1496_s2 + $0x88] sm:$0xff]  ;;  %v434_v32 = vunpack.c.l.bf16 %v1050_v24  ;;  %v436_v38 = vunpack.c.l.bf16 %v1070_v28  ;;  %v358_v40 = vunpack.c.h.bf16 %v1045_v23  ;;  %v1103_v41 = vld [vmem:[%s1496_s2 + $0x90] sm:$0xff]  ;;  %v435_v45 = vunpack.c.h.bf16 %v1050_v24  ;;  %s910_s19 = sshll.u32 %s1576_s16, 3 }
  0x11   : > { %s191_s20 = scalar_lea.vmem %s1494_s0, %s958_s17  ;;  %v678_v14 = vmul.u32 64, %v672_v12  ;;  %v683_v15 = vadd.s32 1, %v672_v12  ;;  %v675_v16 = vadd.s32 128, %v674_v13  ;;  %v677_v18 = vadd.s32 384, %v674_v13  ;;  %v1060_v26 = vld [vmem:[%s1496_s2 + $0xc0] sm:$0xff]  ;;  %v1080_v30 = vld [vmem:[%s1496_s2 + $0xc8] sm:$0xff]  ;;  %s195_s22 = scalar_lea.vmem %s1498_s4, %s910_s19 }
  0x12   : > { %v197_v1 = vld [vmem:[%s191_s20] sm:$0xff]  ;;  %v198_v2 = vld [vmem:[%s191_s20 + $0x8] sm:$0xff]  ;;  %v676_v19 = vadd.s32 256, %v674_v13  ;;  %v511_v33 = vunpack.c.l.bf16 %v1055_v25  ;;  %v588_v34 = vunpack.c.l.bf16 %v1060_v26  ;;  %v513_v39 = vunpack.c.l.bf16 %v1075_v29  ;;  %v1108_v42 = vld [vmem:[%s1496_s2 + $0xd0] sm:$0xff] }
  0x13   : > { %v914_v3 = vcombine.high %v197_v1, %v197_v1  ;;  %v916_v4 = vcombine.high %v198_v2, %v198_v2  ;;  %v913_v5 = vcombine.low %v197_v1, %v197_v1  ;;  %v915_v6 = vcombine.low %v198_v2, %v198_v2  ;;  %v1113_v43 = vld [vmem:[%s1496_s2 + $0x18] sm:$0xff]  ;;  %v1145_v59 = vld [vmem:[%s1496_s2 + $0x20] sm:$0xff]  ;;  %v1220_v12 = vld [vmem:[%s1496_s2 + $0xf0] sm:$0xff] }
  0x14   : > { %v684_v17 = vmul.u32 64, %v683_v15  ;;  %vm679_vm2 = vcmp.ge.s32.totalorder %v674_v13, %v678_v14  ;;  %vm680_vm3 = vcmp.ge.s32.totalorder %v675_v16, %v678_v14  ;;  %vm682_vm6 = vcmp.ge.s32.totalorder %v677_v18, %v678_v14  ;;  %v1122_v48 = vld [vmem:[%s1496_s2 + $0x58] sm:$0xff]  ;;  %v1159_v1 = vld [vmem:[%s1496_s2 + $0xa0] sm:$0xff] }
  0x15   : > { %917 = vmatprep.subr.msk.bf16.mxu0 %vm230_vm0, %v914_v3  ;;  %920 = vmatprep.subr.msk.bf16.mxu1 %vm230_vm0, %v916_v4  ;;  %v232_v7 = vsel %vm230_vm0, %v913_v5, 0  ;;  %v238_v8 = vsel %vm230_vm0, %v915_v6, 0  ;;  %vm681_vm9 = vcmp.ge.s32.totalorder %v676_v19, %v678_v14  ;;  %v590_v44 = vunpack.c.l.bf16 %v1080_v30  ;;  %v1127_v49 = vld [vmem:[%s1496_s2 + $0x98] sm:$0xff]  ;;  %v1164_v2 = vld [vmem:[%s1496_s2 + $0xe0] sm:$0xff]  ;;  %v1192_v14 = vld [vmem:[%s1496_s2 + $0xe8] sm:$0xff] }
  0x16   : > { %244 = vmatpush1.bf16.msra.mxu0 %v232_v7  ;;  %297 = vmatpush1.bf16.msra.mxu1 %v238_v8  ;;  %vm686_vm4 = vcmp.lt.s32.totalorder %v675_v16, %v684_v17  ;;  %vm685_vm5 = vcmp.lt.s32.totalorder %v674_v13, %v684_v17  ;;  %vm688_vm8 = vcmp.lt.s32.totalorder %v677_v18, %v684_v17  ;;  %v512_v46 = vunpack.c.h.bf16 %v1055_v25  ;;  %v1132_v50 = vld [vmem:[%s1496_s2 + $0xd8] sm:$0xff]  ;;  %v1173_v7 = vld [vmem:[%s1496_s2 + $0x28] sm:$0xff]  ;;  %v1215_v18 = vld [vmem:[%s1496_s2 + $0xb0] sm:$0xff] }
  0x17   : > { %vm690_vm7 = vmand %vm680_vm3, %vm686_vm4  ;;  %vm687_vm10 = vcmp.lt.s32.totalorder %v676_v19, %v684_v17  ;;  %v589_v47 = vunpack.c.h.bf16 %v1060_v26  ;;  %v360_v51 = vunpack.c.h.bf16 %v1065_v27  ;;  %v437_v52 = vunpack.c.h.bf16 %v1070_v28  ;;  %v1178_v8 = vld [vmem:[%s1496_s2 + $0x68] sm:$0xff]  ;;  %v1201_v19 = vld [vmem:[%s1496_s2 + $0x30] sm:$0xff] }
  0x18   : > { %vm1033_vm11 = vmand %vm679_vm2, %vm685_vm5  ;;  %v514_v53 = vunpack.c.h.bf16 %v1075_v29  ;;  %v591_v54 = vunpack.c.h.bf16 %v1080_v30  ;;  %v361_v55 = vunpack.c.l.bf16 %v1089_v35  ;;  %v1225_v13 = vld [vmem:[%s1496_s2 + $0x38] sm:$0xff]  ;;  %v1521_v26 = vunpack.c.l.bf16 %v1094_v36 }
  0x19   : > { %918 = vmatmul.mubr.msk.bf16.vlgmr.msra.gmra.mrb[0].mxu0 %vm223_vm1, %v975_v9  ;;  %921 = vmatmul.mubr.msk.bf16.vlgmr.msra.gmra.mrb[0].mxu1 %vm223_vm1, %v975_v9  ;;  %v1512_v21 = vsel %vm1033_vm11, 4294967295, %v1511_v21  ;;  %vm692_vm12 = vmand %vm682_vm6, %vm688_vm8  ;;  %v1183_v9 = vld [vmem:[%s1496_s2 + $0xa8] sm:$0xff]  ;;  %1517 = vst [vmem:[#allocation4_spill] sm:$0xff] %v1225_v13  ;;  %v1239_v6 = vld [vmem:[%s1496_s2 + $0xb8] sm:$0xff]  ;;  %v1523_v27 = vunpack.c.l.bf16 %v1108_v42  ;;  %v1524_v28 = vunpack.c.l.bf16 %v1113_v43  ;;  %v1525_v29 = vunpack.c.l.bf16 %v1122_v48 }
  0x1a   : > { %285 = vmatprep.mubr.bf16.mxu0 %v985_v0  ;;  %338 = vmatprep.mubr.bf16.mxu1 %v985_v0  ;;  %1513 = vst [vmem:[#allocation2_spill] sm:$0xff] %v1512_v21  ;;  %vm1038_vm13 = vmand %vm681_vm9, %vm687_vm10  ;;  %v1154_v0 = vld [vmem:[%s1496_s2 + $0x60] sm:$0xff]  ;;  %v1244_v15 = vld [vmem:[%s1496_s2 + $0xf8] sm:$0xff]  ;;  %v1526_v30 = vunpack.c.l.bf16 %v1127_v49  ;;  %vm656_vm14 = vcmask 1040384   ;;  %vm661_vm15 = vcmask 1041408   ;;  %vm666_vm0 = vcmask 1042432  }
  0x1b   : > { %v1515_v22 = vsel %vm1038_vm13, 4294967295, %v1514_v22  ;;  %1519 = vst [vmem:[#allocation6_spill] sm:$0xff] %v1239_v6  ;;  %1520 = vst [vmem:[#allocation7_spill] sm:$0xff] %v1244_v15 }
  0x1c   : > { %1516 = vst [vmem:[#allocation3_spill] sm:$0xff] %v1515_v22 }
  0x21   : > { %919 = vmatmul.mubr.msk.bf16.gmra.mrb[4].mxu0 %vm223_vm1, %v976_v10  ;;  %922 = vmatmul.mubr.msk.bf16.gmra.mrb[4].mxu1 %vm223_vm1, %v976_v10  ;;  %v1234_v10 = vld [vmem:[%s1496_s2 + $0x78] sm:$0xff]  ;;  %vm848_vm1 = vcmask 31744  }
  0x22   : > { %952 = vmatprep.mubr.msk.f32.mxu1 %vm690_vm7, %v1499_v20  ;;  %954 = vmatprep.mubr.msk.f32.mxu0 %vm692_vm12, %v1499_v20  ;;  %v1206_v20 = vld [vmem:[%s1496_s2 + $0x70] sm:$0xff]  ;;  %1518 = vst [vmem:[#allocation5_spill] sm:$0xff] %v1234_v10 }
  0xec   : > { %v277_v58 = vpop.f32.mrb[0].mxu0  ;;  %v330_v63 = vpop.f32.mrb[0].mxu1 }
  0xed   : > { %v373_v17 = vmul.f32 %v357_v31, %v277_v58  ;;  %v450_v5 = vmul.f32 %v434_v32, %v277_v58  ;;  %v527_v4 = vmul.f32 %v511_v33, %v277_v58  ;;  %v604_v3 = vmul.f32 %v588_v34, %v277_v58  ;;  %v279_v11 = vpop.f32.mrb[1].mxu0  ;;  %v332_v62 = vpop.f32.mrb[1].mxu1 }
  0xee   : > { %v375_v61 = vmul.f32 %v359_v37, %v330_v63  ;;  %v452_v16 = vmul.f32 %v436_v38, %v330_v63  ;;  %v529_v31 = vmul.f32 %v513_v39, %v330_v63  ;;  %v606_v32 = vmul.f32 %v590_v44, %v330_v63  ;;  %v281_v60 = vpop.f32.mrb[2].mxu0  ;;  %v334_v57 = vpop.f32.mrb[2].mxu1 }
  0xef   : > { %v374_v33 = vmul.f32 %v358_v40, %v279_v11  ;;  %v451_v34 = vmul.f32 %v435_v45, %v279_v11  ;;  %v528_v37 = vmul.f32 %v512_v46, %v279_v11  ;;  %v605_v38 = vmul.f32 %v589_v47, %v279_v11  ;;  %v283_v58 = vpop.f32.mrb[3].mxu0  ;;  %v336_v56 = vpop.f32.mrb[3].mxu1 }
  0xf0   : > { %v376_v39 = vmul.f32 %v360_v51, %v332_v62  ;;  %v453_v44 = vmul.f32 %v437_v52, %v332_v62  ;;  %v530_v23 = vmul.f32 %v514_v53, %v332_v62  ;;  %v607_v24 = vmul.f32 %v591_v54, %v332_v62 }
  0xf1   : > { %v377_v25 = vmul.f32 %v361_v55, %v281_v60  ;;  %v454_v40 = vmul.f32 %v1521_v26, %v281_v60  ;;  %v1522_v45 = vunpack.c.l.bf16 %v1103_v41  ;;  %v608_v47 = vmul.f32 %v1523_v27, %v281_v60 }
  0xf2   : > { %v379_v51 = vmul.f32 %v1524_v28, %v334_v57  ;;  %v456_v52 = vmul.f32 %v1525_v29, %v334_v57  ;;  %v533_v53 = vmul.f32 %v1526_v30, %v334_v57  ;;  %v1527_v54 = vunpack.c.l.bf16 %v1132_v50 }
  0xf3   : > { %v531_v46 = vmul.f32 %v1522_v45, %v281_v60  ;;  %v389_v62 = vadd.f32 %v377_v25, %v373_v17  ;;  %v466_v63 = vadd.f32 %v454_v40, %v450_v5  ;;  %v620_v26 = vadd.f32 %v608_v47, %v604_v3 }
  0xf4   : > { %v610_v55 = vmul.f32 %v1527_v54, %v334_v57  ;;  %v407_v45 = vadd.f32 %v379_v51, %v375_v61  ;;  %v484_v22 = vadd.f32 %v456_v52, %v452_v16  ;;  %v561_v21 = vadd.f32 %v533_v53, %v529_v31  ;;  %v287_v27 = vpop.f32.mrb[4].mxu0  ;;  %v340_v15 = vpop.f32.mrb[4].mxu1 }
  0xf5   : > { %v543_v11 = vadd.f32 %v531_v46, %v527_v4  ;;  %v1528_v28 = vunpack.c.h.bf16 %v1089_v35  ;;  %v1529_v29 = vunpack.c.h.bf16 %v1094_v36  ;;  %v1530_v30 = vunpack.c.h.bf16 %v1103_v41  ;;  %v289_v4 = vpop.f32.mrb[5].mxu0  ;;  %v342_v3 = vpop.f32.mrb[5].mxu1 }
  0xf6   : > { %v638_v60 = vadd.f32 %v610_v55, %v606_v32  ;;  %v1531_v57 = vunpack.c.h.bf16 %v1108_v42  ;;  %v1532_v61 = vunpack.c.h.bf16 %v1113_v43  ;;  %v1533_v17 = vunpack.c.h.bf16 %v1122_v48  ;;  %v291_v40 = vpop.f32.mrb[6].mxu0  ;;  %v344_v41 = vpop.f32.mrb[6].mxu1 }
  0xf7   : > { %v378_v6 = vmul.f32 %v1528_v28, %v283_v58  ;;  %v455_v10 = vmul.f32 %v1529_v29, %v283_v58  ;;  %v532_v13 = vmul.f32 %v1530_v30, %v283_v58  ;;  %v1534_v35 = vunpack.c.h.bf16 %v1127_v49  ;;  %v1330_v51 = vpop.f32.mrb[7].mxu0  ;;  %v1332_v52 = vpop.f32.mrb[7].mxu1 }
  0xf8   : > { %v609_v5 = vmul.f32 %v1531_v57, %v283_v58  ;;  %v380_v16 = vmul.f32 %v1532_v61, %v336_v56  ;;  %v457_v31 = vmul.f32 %v1533_v17, %v336_v56  ;;  %v1535_v36 = vunpack.c.h.bf16 %v1132_v50 }
  0xf9   : > { %v534_v32 = vmul.f32 %v1534_v35, %v336_v56  ;;  %v398_v46 = vadd.f32 %v378_v6, %v374_v33  ;;  %v475_v47 = vadd.f32 %v455_v10, %v451_v34  ;;  %v552_v42 = vadd.f32 %v532_v13, %v528_v37 }
  0xfa   : > { %v611_v25 = vmul.f32 %v1535_v36, %v336_v56  ;;  %v629_v58 = vadd.f32 %v609_v5, %v605_v38  ;;  %v416_v43 = vadd.f32 %v380_v16, %v376_v39  ;;  %v493_v53 = vadd.f32 %v457_v31, %v453_v44 }
  0xfb   : > { %v570_v48 = vadd.f32 %v534_v32, %v530_v23  ;;  %v1536_v49 = vunpack.c.l.bf16 %v1145_v59  ;;  %v1537_v50 = vunpack.c.l.bf16 %v1154_v0  ;;  %v1538_v28 = vunpack.c.l.bf16 %v1159_v1 }
  0xfc   : > { %v647_v54 = vadd.f32 %v611_v25, %v607_v24  ;;  %v1539_v10 = vunpack.c.l.bf16 %v1164_v2  ;;  %v1540_v33 = vunpack.c.l.bf16 %v1173_v7  ;;  %v1541_v37 = vunpack.c.l.bf16 %v1178_v8 }
  0xfd   : > { %v381_v55 = vmul.f32 %v1536_v49, %v287_v27  ;;  %v458_v56 = vmul.f32 %v1537_v50, %v287_v27  ;;  %v535_v6 = vmul.f32 %v1538_v28, %v287_v27  ;;  %v1542_v39 = vunpack.c.l.bf16 %v1183_v9 }
  0xfe   : > { %v612_v13 = vmul.f32 %v1539_v10, %v287_v27  ;;  %v383_v34 = vmul.f32 %v1540_v33, %v340_v15  ;;  %v460_v38 = vmul.f32 %v1541_v37, %v340_v15  ;;  %v1543_v23 = vunpack.c.l.bf16 %v1192_v14 }
  0xff   : > { %v537_v44 = vmul.f32 %v1542_v39, %v340_v15  ;;  %v390_v29 = vadd.f32 %v389_v62, %v381_v55  ;;  %v467_v30 = vadd.f32 %v466_v63, %v458_v56  ;;  %v544_v57 = vadd.f32 %v543_v11, %v535_v6  ;;  %v1558_v6 = vld [vmem:[#allocation5_spill] sm:$0xff] }
 0x100   : > { %v614_v24 = vmul.f32 %v1543_v23, %v340_v15  ;;  %v621_v5 = vadd.f32 %v620_v26, %v612_v13  ;;  %v408_v61 = vadd.f32 %v407_v45, %v383_v34  ;;  %v485_v16 = vadd.f32 %v484_v22, %v460_v38  ;;  %v1562_v34 = vld [vmem:[#allocation7_spill] sm:$0xff] }
 0x101   : > { %v562_v17 = vadd.f32 %v561_v21, %v537_v44  ;;  %v1544_v31 = vunpack.c.h.bf16 %v1145_v59  ;;  %v1545_v32 = vunpack.c.h.bf16 %v1154_v0  ;;  %v1546_v25 = vunpack.c.h.bf16 %v1159_v1 }
 0x102   : > { %v639_v27 = vadd.f32 %v638_v60, %v614_v24  ;;  %v1547_v50 = vunpack.c.h.bf16 %v1164_v2  ;;  %v1548_v62 = vunpack.c.h.bf16 %v1173_v7  ;;  %v1549_v11 = vunpack.c.h.bf16 %v1178_v8 }
 0x103   : > { %v382_v35 = vmul.f32 %v1544_v31, %v289_v4  ;;  %v459_v36 = vmul.f32 %v1545_v32, %v289_v4  ;;  %v536_v49 = vmul.f32 %v1546_v25, %v289_v4  ;;  %v1550_v21 = vunpack.c.h.bf16 %v1183_v9 }
 0x104   : > { %v613_v15 = vmul.f32 %v1547_v50, %v289_v4  ;;  %v384_v63 = vmul.f32 %v1548_v62, %v342_v3  ;;  %v461_v22 = vmul.f32 %v1549_v11, %v342_v3  ;;  %v1551_v59 = vunpack.c.h.bf16 %v1192_v14 }
 0x105   : > { %v538_v26 = vmul.f32 %v1550_v21, %v342_v3  ;;  %v399_v0 = vadd.f32 %v398_v46, %v382_v35  ;;  %v476_v60 = vadd.f32 %v475_v47, %v459_v36  ;;  %v1366_v55 = vadd.f32 %v552_v42, %v536_v49 }
 0x106   : > { %v615_v45 = vmul.f32 %v1551_v59, %v342_v3  ;;  %v1368_v1 = vadd.f32 %v629_v58, %v613_v15  ;;  %v1370_v2 = vadd.f32 %v416_v43, %v384_v63  ;;  %v1372_v4 = vadd.f32 %v493_v53, %v461_v22  ;;  %v1556_v43 = vld [vmem:[#allocation4_spill] sm:$0xff] }
 0x107   : > { %v1374_v7 = vadd.f32 %v570_v48, %v538_v26  ;;  %v1552_v9 = vunpack.c.l.bf16 %v1201_v19  ;;  %v1553_v14 = vunpack.c.l.bf16 %v1206_v20  ;;  %v1554_v46 = vunpack.c.l.bf16 %v1215_v18 }
 0x108   : > { %v1376_v8 = vadd.f32 %v647_v54, %v615_v45  ;;  %v1555_v42 = vunpack.c.l.bf16 %v1220_v12  ;;  %v1557_v28 = vunpack.c.l.bf16 %v1556_v43  ;;  %v1559_v48 = vunpack.c.l.bf16 %v1558_v6  ;;  %v1560_v54 = vld [vmem:[#allocation6_spill] sm:$0xff] }
 0x109   : > { %v385_v56 = vmul.f32 %v1552_v9, %v291_v40  ;;  %v462_v3 = vmul.f32 %v1553_v14, %v291_v40  ;;  %v539_v47 = vmul.f32 %v1554_v46, %v291_v40  ;;  %v1561_v13 = vunpack.c.l.bf16 %v1560_v54 }
 0x10a   : > { %v616_v58 = vmul.f32 %v1555_v42, %v291_v40  ;;  %v387_v53 = vmul.f32 %v1557_v28, %v344_v41  ;;  %v464_v10 = vmul.f32 %v1559_v48, %v344_v41  ;;  %v1563_v37 = vunpack.c.l.bf16 %v1562_v34 }
 0x10b   : > { %v541_v33 = vmul.f32 %v1561_v13, %v344_v41  ;;  %v391_v39 = vadd.f32 %v390_v29, %v385_v56  ;;  %v468_v44 = vadd.f32 %v467_v30, %v462_v3  ;;  %v545_v23 = vadd.f32 %v544_v57, %v539_v47 }
 0x10c   : > { %v618_v38 = vmul.f32 %v1563_v37, %v344_v41  ;;  %v622_v24 = vadd.f32 %v621_v5, %v616_v58  ;;  %v409_v31 = vadd.f32 %v408_v61, %v387_v53  ;;  %v486_v35 = vadd.f32 %v485_v16, %v464_v10 }
 0x10d   : > { %v563_v32 = vadd.f32 %v562_v17, %v541_v33  ;;  %v392_v36 = vrot.slane %v391_v39, 4  ;;  %v469_v25 = vrot.slane %v468_v44, 4  ;;  %v546_v49 = vrot.slane %v545_v23, 4 }
 0x10e   : > { %v640_v40 = vadd.f32 %v639_v27, %v618_v38  ;;  %v623_v50 = vrot.slane %v622_v24, 4  ;;  %v410_v15 = vrot.slane %v409_v31, 4  ;;  %v487_v62 = vrot.slane %v486_v35, 4 }
 0x10f   : > { %v564_v63 = vrot.slane %v563_v32, 4  ;;  %v393_v22 = vadd.f32 %v392_v36, %v391_v39  ;;  %v470_v21 = vadd.f32 %v469_v25, %v468_v44  ;;  %v547_v26 = vadd.f32 %v546_v49, %v545_v23 }
 0x110   : > { %v641_v11 = vrot.slane %v640_v40, 4  ;;  %v1394_v41 = vadd.f32 %v623_v50, %v622_v24  ;;  %v411_v29 = vadd.f32 %v410_v15, %v409_v31  ;;  %v488_v30 = vadd.f32 %v487_v62, %v486_v35 }
 0x111   : > { %v565_v57 = vadd.f32 %v564_v63, %v563_v32  ;;  %v394_v61 = vrot.slane %v393_v22, 2  ;;  %v471_v16 = vrot.slane %v470_v21, 2  ;;  %v548_v17 = vrot.slane %v547_v26, 2 }
 0x112   : > { %v1396_v5 = vadd.f32 %v641_v11, %v640_v40  ;;  %v625_v27 = vrot.slane %v1394_v41, 2  ;;  %v412_v59 = vrot.slane %v411_v29, 2  ;;  %v489_v45 = vrot.slane %v488_v30, 2 }
 0x113   : > { %v566_v9 = vrot.slane %v565_v57, 2  ;;  %v1400_v14 = vadd.f32 %v394_v61, %v393_v22  ;;  %v1402_v3 = vadd.f32 %v471_v16, %v470_v21  ;;  %v1404_v46 = vadd.f32 %v548_v17, %v547_v26 }
 0x114   : > { %v643_v56 = vrot.slane %v1396_v5, 2  ;;  %v1564_v47 = vunpack.c.h.bf16 %v1201_v19  ;;  %v1409_v58 = vadd.f32 %v412_v59, %v411_v29  ;;  %v1411_v28 = vadd.f32 %v489_v45, %v488_v30 }
 0x115   : > { %v1413_v53 = vadd.f32 %v566_v9, %v565_v57  ;;  %v1565_v48 = vunpack.c.h.bf16 %v1206_v20  ;;  %v396_v13 = vrot.slane %v1400_v14, 1  ;;  %v473_v33 = vrot.slane %v1402_v3, 1 }
 0x116   : > { %v386_v42 = vmul.f32 %v1564_v47, %v1330_v51  ;;  %v1566_v38 = vunpack.c.h.bf16 %v1215_v18  ;;  %v414_v39 = vrot.slane %v1409_v58, 1  ;;  %v491_v44 = vrot.slane %v1411_v28, 1 }
 0x117   : > { %v463_v10 = vmul.f32 %v1565_v48, %v1330_v51  ;;  %v1567_v24 = vunpack.c.h.bf16 %v1220_v12  ;;  %v1568_v32 = vunpack.c.h.bf16 %v1556_v43  ;;  %v1569_v18 = vunpack.c.h.bf16 %v1558_v6 }
 0x118   : > { %v400_v37 = vadd.f32 %v399_v0, %v386_v42  ;;  %v540_v19 = vmul.f32 %v1566_v38, %v1330_v51  ;;  %v1571_v12 = vunpack.c.h.bf16 %v1562_v34 }
 0x119   : > { %v477_v23 = vadd.f32 %v476_v60, %v463_v10  ;;  %v617_v31 = vmul.f32 %v1567_v24, %v1330_v51  ;;  %v388_v0 = vmul.f32 %v1568_v32, %v1332_v52  ;;  %v465_v40 = vmul.f32 %v1569_v18, %v1332_v52 }
 0x11a   : > { %v401_v20 = vrot.slane %v400_v37, 4  ;;  %v554_v35 = vadd.f32 %v1366_v55, %v540_v19  ;;  %v1570_v60 = vunpack.c.h.bf16 %v1560_v54  ;;  %v619_v51 = vmul.f32 %v1571_v12, %v1332_v52 }
 0x11b   : > { %v478_v36 = vrot.slane %v477_v23, 4  ;;  %v631_v25 = vadd.f32 %v1368_v1, %v617_v31  ;;  %v418_v43 = vadd.f32 %v1370_v2, %v388_v0  ;;  %v495_v15 = vadd.f32 %v1372_v4, %v465_v40 }
 0x11c   : > { %v542_v49 = vmul.f32 %v1570_v60, %v1332_v52  ;;  %v402_v55 = vadd.f32 %v401_v20, %v400_v37  ;;  %v555_v50 = vrot.slane %v554_v35, 4  ;;  %v649_v1 = vadd.f32 %v1376_v8, %v619_v51 }
 0x11d   : > { %v479_v6 = vadd.f32 %v478_v36, %v477_v23  ;;  %v632_v62 = vrot.slane %v631_v25, 4  ;;  %v419_v22 = vrot.slane %v418_v43, 4  ;;  %v496_v21 = vrot.slane %v495_v15, 4 }
 0x11e   : > { %v572_v63 = vadd.f32 %v1374_v7, %v542_v49  ;;  %v403_v54 = vrot.slane %v402_v55, 2  ;;  %v556_v11 = vadd.f32 %v555_v50, %v554_v35  ;;  %v650_v29 = vrot.slane %v649_v1, 4 }
 0x11f   : > { %v480_v52 = vrot.slane %v479_v6, 2  ;;  %v633_v34 = vadd.f32 %v632_v62, %v631_v25  ;;  %v420_v4 = vadd.f32 %v419_v22, %v418_v43  ;;  %v497_v57 = vadd.f32 %v496_v21, %v495_v15 }
 0x120   : > { %v573_v26 = vrot.slane %v572_v63, 4  ;;  %v404_v2 = vadd.f32 %v403_v54, %v402_v55  ;;  %v557_v30 = vrot.slane %v556_v11, 2  ;;  %v651_v17 = vadd.f32 %v650_v29, %v649_v1 }
 0x121   : > { %v481_v61 = vadd.f32 %v480_v52, %v479_v6  ;;  %v634_v7 = vrot.slane %v633_v34, 2  ;;  %v421_v59 = vrot.slane %v420_v4, 2  ;;  %v498_v8 = vrot.slane %v497_v57, 2 }
 0x122   : > { %v574_v16 = vadd.f32 %v573_v26, %v572_v63  ;;  %v405_v45 = vrot.slane %v404_v2, 1  ;;  %v558_v9 = vadd.f32 %v557_v30, %v556_v11  ;;  %v652_v10 = vrot.slane %v651_v17, 2 }
 0x123   : > { %v482_v42 = vrot.slane %v481_v61, 1  ;;  %v635_v48 = vadd.f32 %v634_v7, %v633_v34  ;;  %v422_v37 = vadd.f32 %v421_v59, %v420_v4  ;;  %v499_v38 = vadd.f32 %v498_v8, %v497_v57 }
 0x124   : > { %v575_v47 = vrot.slane %v574_v16, 2  ;;  %v406_v19 = vadd.f32 %v405_v45, %v404_v2  ;;  %v559_v23 = vrot.slane %v558_v9, 1  ;;  %v653_v35 = vadd.f32 %v652_v10, %v651_v17 }
 0x125   : > { %v483_v24 = vadd.f32 %v482_v42, %v481_v61  ;;  %v636_v31 = vrot.slane %v635_v48, 1  ;;  %v423_v0 = vrot.slane %v422_v37, 1  ;;  %v500_v18 = vrot.slane %v499_v38, 1 }
 0x126   : > { %v576_v20 = vadd.f32 %v575_v47, %v574_v16  ;;  %v560_v32 = vadd.f32 %v559_v23, %v558_v9  ;;  %v397_v40 = vadd.f32 %v396_v13, %v1400_v14  ;;  %v654_v49 = vrot.slane %v653_v35, 1 }
 0x127   : > { %v637_v36 = vadd.f32 %v636_v31, %v635_v48  ;;  %v658_v25 = vsel %vm656_vm14, %v406_v19, %v483_v24  ;;  %v424_v51 = vadd.f32 %v423_v0, %v422_v37  ;;  %v501_v55 = vadd.f32 %v500_v18, %v499_v38 }
 0x128   : > { %v577_v60 = vrot.slane %v576_v20, 1  ;;  %v663_v12 = vsel %vm661_vm15, %v658_v25, %v560_v32  ;;  %v474_v50 = vadd.f32 %v473_v33, %v1402_v3  ;;  %v655_v6 = vadd.f32 %v654_v49, %v653_v35 }
 0x129   : > { %v668_v43 = vsel %vm666_vm0, %v663_v12, %v637_v36  ;;  %v550_v62 = vrot.slane %v1404_v46, 1  ;;  %v660_v14 = vsel %vm656_vm14, %v424_v51, %v501_v55  ;;  %v626_v13 = vadd.f32 %v625_v27, %v1394_v41 }
 0x12a   : > { %v578_v15 = vadd.f32 %v577_v60, %v576_v20  ;;  %708 = vmatprep.subr.mxu1 %v668_v43  ;;  %v657_v63 = vsel %vm656_vm14, %v397_v40, %v474_v50  ;;  %v415_v1 = vadd.f32 %v414_v39, %v1409_v58  ;;  %v492_v54 = vadd.f32 %v491_v44, %v1411_v28 }
 0x12b   : > { %v551_v33 = vadd.f32 %v550_v62, %v1404_v46  ;;  %v568_v11 = vrot.slane %v1413_v53, 1  ;;  %v627_v21 = vrot.slane %v626_v13, 1  ;;  %v644_v41 = vadd.f32 %v643_v56, %v1396_v5 }
 0x12c   : > { %v665_v3 = vsel %vm661_vm15, %v660_v14, %v578_v15  ;;  %v659_v46 = vsel %vm656_vm14, %v415_v1, %v492_v54  ;;  %v1572_v5 = vmov 1.0  }
 0x12d   : > { %v670_v22 = vsel %vm666_vm0, %v665_v3, %v655_v6  ;;  %v662_v27 = vsel %vm661_vm15, %v657_v63, %v551_v33  ;;  %v569_v58 = vadd.f32 %v568_v11, %v1413_v53  ;;  %v628_v39 = vadd.f32 %v627_v21, %v626_v13  ;;  %v951_v53 = vld [vmem:[%s1497_s3] ss:$0 sm:$0xff] }
 0x12e   : > { %778 = vmatprep.subr.mxu0 %v670_v22  ;;  %v645_v52 = vrot.slane %v644_v41, 1 }
 0x12f   : > { %v664_v28 = vsel %vm661_vm15, %v659_v46, %v569_v58  ;;  %v667_v44 = vsel %vm666_vm0, %v662_v27, %v628_v39 }
 0x130   : > { %v646_v34 = vadd.f32 %v645_v52, %v644_v41  ;;  %709 = vmatpush1.xpose.msra.mxu1 %v667_v44 }
 0x132   : > { %v669_v26 = vsel %vm666_vm0, %v664_v28, %v646_v34 }
 0x133   : > { %779 = vmatpush1.xpose.msra.mxu0 %v669_v26  ;;  %953 = vmatmul.mubr.msk.f32.vlgmr.msra.gmra.mrb[8].mxu1 %vm1033_vm11, %v1572_v5 }
 0x136   : > { %955 = vmatmul.mubr.msk.f32.vlgmr.msra.gmra.mrb[8].mxu0 %vm1038_vm13, %v1572_v5 }
 0x206   : > { %v774_v2 = vpop.f32.mrb[8].mxu1 }
 0x207   : > { %v775_v30 = vadd.f32 %v951_v53, %v774_v2  ;;  %v776_v4 = vpop.f32.mrb[9].mxu1 }
 0x209   : > { %v844_v57 = vpop.f32.mrb[8].mxu0 }
 0x20a   : > { %v845_v61 = vadd.f32 %v844_v57, %v775_v30  ;;  %v846_v16 = vpop.f32.mrb[9].mxu0 }
 0x20c   : > { %849 = vst.msk [vmem:[%s195_s22] sm:$0xff] %vm848_vm1, %v845_v61 }
 0x20d PF: > { %s14_s15 = sadd.s32 1, %s983_s15  }
 0x20e   : > { %p11_p4 = scmp.ge.s32.totalorder %s14_s15, 4  }
 0x210   :  { %13 = sbr.rel (!%p11_p4) target bundleno = 1 (0x1), region = 69 }

// kernel: mifnet_forward.1
= control target key start
LH: loop header
LB: loop body
LE: loop exit
PB: predicated region body
PF: predicated region fallthrough
CT: control target
= control target key end

     0   :  { %s1012_s15 = smov 0   ;;  %s1494_s0 = inlined_call_operand.vmem [shape: bf16[2,8,512], index: 0, kind: input, shape index: {}]   ;;  %s1495_s1 = inlined_call_operand.vmem [shape: bf16[32,8], index: 1, kind: input, shape index: {}]   ;;  %s1496_s2 = inlined_call_operand.vmem [shape: bf16[4,32,512], index: 2, kind: input, shape index: {}]   ;;  %s1497_s3 = inlined_call_operand.vmem [shape: f32[1,4], index: 3, kind: input, shape index: {}]   ;;  %s1498_s4 = inlined_call_operand.vmem [shape: f32[16,4], index: 4, kind: output, shape index: {}]  }
   0x1 LB: > { %s903_s16 = sadd.s32 4294967295, %s983_s15   ;;  %p907_p0 = scmp.ge.s32.totalorder %s983_s15, 1  ;;  %s983_s15 = sphi %s1012_s15, %s14_s15  }
   0x2   : > { %p162_p1 = scmp.lt.s32.totalorder %s983_s15, 3 }
   0x4   : > { %p163_p2 = pnand %p907_p0, %p162_p1 }
   0x6   : > { %166 = sbr.rel (%p163_p2) target bundleno = 525 (0x20d), region = 36 }
   0xd   : > { %p187_p3 = scmp.lt.s32.totalorder %s903_s16, 1  ;;  %v985_v0 = vmov 0   ;;  %vm230_vm0 = vcmask 1043456   ;;  %v975_v9 = vld [vmem:[%s1495_s1] sm:$0xff]   ;;  %vm223_vm1 = vcmask 64512   ;;  %v976_v10 = vld [vmem:[%s1495_s1 + $0x8] sm:$0xff]   ;;  %v671_v11 = vlaneseq }
   0xe   : > { %275 = vmatprep.mubr.bf16.mxu0 %v985_v0  ;;  %328 = vmatprep.mubr.bf16.mxu1 %v985_v0  ;;  %v1499_v20 = vmov 1.0   ;;  %v1511_v21 = vmov 0  ;;  %v1514_v22 = vmov 0  ;;  %v1045_v23 = vld [vmem:[%s1496_s2] sm:$0xff]  ;;  %v1065_v27 = vld [vmem:[%s1496_s2 + $0x8] sm:$0xff]  ;;  %v1089_v35 = vld [vmem:[%s1496_s2 + $0x10] sm:$0xff] }
   0xf   : > { %s1576_s16 = smov (!%p187_p3, %s903_s16), 1  ;;  %v672_v12 = vshrl.u32 %v671_v11, 7  ;;  %v674_v13 = vand.u32 127, %v671_v11  ;;  %v1050_v24 = vld [vmem:[%s1496_s2 + $0x40] sm:$0xff]  ;;  %v1070_v28 = vld [vmem:[%s1496_s2 + $0x48] sm:$0xff]  ;;  %v357_v31 = vunpack.c.l.bf16 %v1045_v23  ;;  %v1094_v36 = vld [vmem:[%s1496_s2 + $0x50] sm:$0xff]  ;;  %v359_v37 = vunpack.c.l.bf16 %v1065_v27 }
  0x10   : > { %s958_s17 = sshll.u32 %s1576_s16, 4  ;;  %v1055_v25 = vld [vmem:[%s1496_s2 + $0x80] sm:$0xff]  ;;  %v1075_v29 = vld [vmem:[%s1496_s2 + $0x88] sm:$0xff]  ;;  %v434_v32 = vunpack.c.l.bf16 %v1050_v24  ;;  %v436_v38 = vunpack.c.l.bf16 %v1070_v28  ;;  %v358_v40 = vunpack.c.h.bf16 %v1045_v23  ;;  %v1103_v41 = vld [vmem:[%s1496_s2 + $0x90] sm:$0xff]  ;;  %v435_v45 = vunpack.c.h.bf16 %v1050_v24  ;;  %s910_s19 = sshll.u32 %s1576_s16, 3 }
  0x11   : > { %s191_s20 = scalar_lea.vmem %s1494_s0, %s958_s17  ;;  %v678_v14 = vmul.u32 64, %v672_v12  ;;  %v683_v15 = vadd.s32 1, %v672_v12  ;;  %v675_v16 = vadd.s32 128, %v674_v13  ;;  %v677_v18 = vadd.s32 384, %v674_v13  ;;  %v1060_v26 = vld [vmem:[%s1496_s2 + $0xc0] sm:$0xff]  ;;  %v1080_v30 = vld [vmem:[%s1496_s2 + $0xc8] sm:$0xff]  ;;  %s195_s22 = scalar_lea.vmem %s1498_s4, %s910_s19 }
  0x12   : > { %v197_v1 = vld [vmem:[%s191_s20] sm:$0xff]  ;;  %v198_v2 = vld [vmem:[%s191_s20 + $0x8] sm:$0xff]  ;;  %v676_v19 = vadd.s32 256, %v674_v13  ;;  %v511_v33 = vunpack.c.l.bf16 %v1055_v25  ;;  %v588_v34 = vunpack.c.l.bf16 %v1060_v26  ;;  %v513_v39 = vunpack.c.l.bf16 %v1075_v29  ;;  %v1108_v42 = vld [vmem:[%s1496_s2 + $0xd0] sm:$0xff] }
  0x13   : > { %v914_v3 = vcombine.high %v197_v1, %v197_v1  ;;  %v916_v4 = vcombine.high %v198_v2, %v198_v2  ;;  %v913_v5 = vcombine.low %v197_v1, %v197_v1  ;;  %v915_v6 = vcombine.low %v198_v2, %v198_v2  ;;  %v1113_v43 = vld [vmem:[%s1496_s2 + $0x18] sm:$0xff]  ;;  %v1145_v59 = vld [vmem:[%s1496_s2 + $0x20] sm:$0xff]  ;;  %v1220_v12 = vld [vmem:[%s1496_s2 + $0xf0] sm:$0xff] }
  0x14   : > { %v684_v17 = vmul.u32 64, %v683_v15  ;;  %vm679_vm2 = vcmp.ge.s32.totalorder %v674_v13, %v678_v14  ;;  %vm680_vm3 = vcmp.ge.s32.totalorder %v675_v16, %v678_v14  ;;  %vm682_vm6 = vcmp.ge.s32.totalorder %v677_v18, %v678_v14  ;;  %v1122_v48 = vld [vmem:[%s1496_s2 + $0x58] sm:$0xff]  ;;  %v1159_v1 = vld [vmem:[%s1496_s2 + $0xa0] sm:$0xff] }
  0x15   : > { %917 = vmatprep.subr.msk.bf16.mxu0 %vm230_vm0, %v914_v3  ;;  %920 = vmatprep.subr.msk.bf16.mxu1 %vm230_vm0, %v916_v4  ;;  %v232_v7 = vsel %vm230_vm0, %v913_v5, 0  ;;  %v238_v8 = vsel %vm230_vm0, %v915_v6, 0  ;;  %vm681_vm9 = vcmp.ge.s32.totalorder %v676_v19, %v678_v14  ;;  %v590_v44 = vunpack.c.l.bf16 %v1080_v30  ;;  %v1127_v49 = vld [vmem:[%s1496_s2 + $0x98] sm:$0xff]  ;;  %v1164_v2 = vld [vmem:[%s1496_s2 + $0xe0] sm:$0xff]  ;;  %v1192_v14 = vld [vmem:[%s1496_s2 + $0xe8] sm:$0xff] }
  0x16   : > { %244 = vmatpush1.bf16.msra.mxu0 %v232_v7  ;;  %297 = vmatpush1.bf16.msra.mxu1 %v238_v8  ;;  %vm686_vm4 = vcmp.lt.s32.totalorder %v675_v16, %v684_v17  ;;  %vm685_vm5 = vcmp.lt.s32.totalorder %v674_v13, %v684_v17  ;;  %vm688_vm8 = vcmp.lt.s32.totalorder %v677_v18, %v684_v17  ;;  %v512_v46 = vunpack.c.h.bf16 %v1055_v25  ;;  %v1132_v50 = vld [vmem:[%s1496_s2 + $0xd8] sm:$0xff]  ;;  %v1173_v7 = vld [vmem:[%s1496_s2 + $0x28] sm:$0xff]  ;;  %v1215_v18 = vld [vmem:[%s1496_s2 + $0xb0] sm:$0xff] }
  0x17   : > { %vm690_vm7 = vmand %vm680_vm3, %vm686_vm4  ;;  %vm687_vm10 = vcmp.lt.s32.totalorder %v676_v19, %v684_v17  ;;  %v589_v47 = vunpack.c.h.bf16 %v1060_v26  ;;  %v360_v51 = vunpack.c.h.bf16 %v1065_v27  ;;  %v437_v52 = vunpack.c.h.bf16 %v1070_v28  ;;  %v1178_v8 = vld [vmem:[%s1496_s2 + $0x68] sm:$0xff]  ;;  %v1201_v19 = vld [vmem:[%s1496_s2 + $0x30] sm:$0xff] }
  0x18   : > { %vm1033_vm11 = vmand %vm679_vm2, %vm685_vm5  ;;  %v514_v53 = vunpack.c.h.bf16 %v1075_v29  ;;  %v591_v54 = vunpack.c.h.bf16 %v1080_v30  ;;  %v361_v55 = vunpack.c.l.bf16 %v1089_v35  ;;  %v1225_v13 = vld [vmem:[%s1496_s2 + $0x38] sm:$0xff]  ;;  %v1521_v26 = vunpack.c.l.bf16 %v1094_v36 }
  0x19   : > { %918 = vmatmul.mubr.msk.bf16.vlgmr.msra.gmra.mrb[0].mxu0 %vm223_vm1, %v975_v9  ;;  %921 = vmatmul.mubr.msk.bf16.vlgmr.msra.gmra.mrb[0].mxu1 %vm223_vm1, %v975_v9  ;;  %v1512_v21 = vsel %vm1033_vm11, 4294967295, %v1511_v21  ;;  %vm692_vm12 = vmand %vm682_vm6, %vm688_vm8  ;;  %v1183_v9 = vld [vmem:[%s1496_s2 + $0xa8] sm:$0xff]  ;;  %1517 = vst [vmem:[#allocation4_spill] sm:$0xff] %v1225_v13  ;;  %v1239_v6 = vld [vmem:[%s1496_s2 + $0xb8] sm:$0xff]  ;;  %v1523_v27 = vunpack.c.l.bf16 %v1108_v42  ;;  %v1524_v28 = vunpack.c.l.bf16 %v1113_v43  ;;  %v1525_v29 = vunpack.c.l.bf16 %v1122_v48 }
  0x1a   : > { %285 = vmatprep.mubr.bf16.mxu0 %v985_v0  ;;  %338 = vmatprep.mubr.bf16.mxu1 %v985_v0  ;;  %1513 = vst [vmem:[#allocation2_spill] sm:$0xff] %v1512_v21  ;;  %vm1038_vm13 = vmand %vm681_vm9, %vm687_vm10  ;;  %v1154_v0 = vld [vmem:[%s1496_s2 + $0x60] sm:$0xff]  ;;  %v1244_v15 = vld [vmem:[%s1496_s2 + $0xf8] sm:$0xff]  ;;  %v1526_v30 = vunpack.c.l.bf16 %v1127_v49  ;;  %vm656_vm14 = vcmask 1040384   ;;  %vm661_vm15 = vcmask 1041408   ;;  %vm666_vm0 = vcmask 1042432  }
  0x1b   : > { %v1515_v22 = vsel %vm1038_vm13, 4294967295, %v1514_v22  ;;  %1519 = vst [vmem:[#allocation6_spill] sm:$0xff] %v1239_v6  ;;  %1520 = vst [vmem:[#allocation7_spill] sm:$0xff] %v1244_v15 }
  0x1c   : > { %1516 = vst [vmem:[#allocation3_spill] sm:$0xff] %v1515_v22 }
  0x21   : > { %919 = vmatmul.mubr.msk.bf16.gmra.mrb[4].mxu0 %vm223_vm1, %v976_v10  ;;  %922 = vmatmul.mubr.msk.bf16.gmra.mrb[4].mxu1 %vm223_vm1, %v976_v10  ;;  %v1234_v10 = vld [vmem:[%s1496_s2 + $0x78] sm:$0xff]  ;;  %vm848_vm1 = vcmask 31744  }
  0x22   : > { %952 = vmatprep.mubr.msk.f32.mxu1 %vm690_vm7, %v1499_v20  ;;  %954 = vmatprep.mubr.msk.f32.mxu0 %vm692_vm12, %v1499_v20  ;;  %v1206_v20 = vld [vmem:[%s1496_s2 + $0x70] sm:$0xff]  ;;  %1518 = vst [vmem:[#allocation5_spill] sm:$0xff] %v1234_v10 }
  0xec   : > { %v277_v58 = vpop.f32.mrb[0].mxu0  ;;  %v330_v63 = vpop.f32.mrb[0].mxu1 }
  0xed   : > { %v373_v17 = vmul.f32 %v357_v31, %v277_v58  ;;  %v450_v5 = vmul.f32 %v434_v32, %v277_v58  ;;  %v527_v4 = vmul.f32 %v511_v33, %v277_v58  ;;  %v604_v3 = vmul.f32 %v588_v34, %v277_v58  ;;  %v279_v11 = vpop.f32.mrb[1].mxu0  ;;  %v332_v62 = vpop.f32.mrb[1].mxu1 }
  0xee   : > { %v375_v61 = vmul.f32 %v359_v37, %v330_v63  ;;  %v452_v16 = vmul.f32 %v436_v38, %v330_v63  ;;  %v529_v31 = vmul.f32 %v513_v39, %v330_v63  ;;  %v606_v32 = vmul.f32 %v590_v44, %v330_v63  ;;  %v281_v60 = vpop.f32.mrb[2].mxu0  ;;  %v334_v57 = vpop.f32.mrb[2].mxu1 }
  0xef   : > { %v374_v33 = vmul.f32 %v358_v40, %v279_v11  ;;  %v451_v34 = vmul.f32 %v435_v45, %v279_v11  ;;  %v528_v37 = vmul.f32 %v512_v46, %v279_v11  ;;  %v605_v38 = vmul.f32 %v589_v47, %v279_v11  ;;  %v283_v58 = vpop.f32.mrb[3].mxu0  ;;  %v336_v56 = vpop.f32.mrb[3].mxu1 }
  0xf0   : > { %v376_v39 = vmul.f32 %v360_v51, %v332_v62  ;;  %v453_v44 = vmul.f32 %v437_v52, %v332_v62  ;;  %v530_v23 = vmul.f32 %v514_v53, %v332_v62  ;;  %v607_v24 = vmul.f32 %v591_v54, %v332_v62 }
  0xf1   : > { %v377_v25 = vmul.f32 %v361_v55, %v281_v60  ;;  %v454_v40 = vmul.f32 %v1521_v26, %v281_v60  ;;  %v1522_v45 = vunpack.c.l.bf16 %v1103_v41  ;;  %v608_v47 = vmul.f32 %v1523_v27, %v281_v60 }
  0xf2   : > { %v379_v51 = vmul.f32 %v1524_v28, %v334_v57  ;;  %v456_v52 = vmul.f32 %v1525_v29, %v334_v57  ;;  %v533_v53 = vmul.f32 %v1526_v30, %v334_v57  ;;  %v1527_v54 = vunpack.c.l.bf16 %v1132_v50 }
  0xf3   : > { %v531_v46 = vmul.f32 %v1522_v45, %v281_v60  ;;  %v389_v62 = vadd.f32 %v377_v25, %v373_v17  ;;  %v466_v63 = vadd.f32 %v454_v40, %v450_v5  ;;  %v620_v26 = vadd.f32 %v608_v47, %v604_v3 }
  0xf4   : > { %v610_v55 = vmul.f32 %v1527_v54, %v334_v57  ;;  %v407_v45 = vadd.f32 %v379_v51, %v375_v61  ;;  %v484_v22 = vadd.f32 %v456_v52, %v452_v16  ;;  %v561_v21 = vadd.f32 %v533_v53, %v529_v31  ;;  %v287_v27 = vpop.f32.mrb[4].mxu0  ;;  %v340_v15 = vpop.f32.mrb[4].mxu1 }
  0xf5   : > { %v543_v11 = vadd.f32 %v531_v46, %v527_v4  ;;  %v1528_v28 = vunpack.c.h.bf16 %v1089_v35  ;;  %v1529_v29 = vunpack.c.h.bf16 %v1094_v36  ;;  %v1530_v30 = vunpack.c.h.bf16 %v1103_v41  ;;  %v289_v4 = vpop.f32.mrb[5].mxu0  ;;  %v342_v3 = vpop.f32.mrb[5].mxu1 }
  0xf6   : > { %v638_v60 = vadd.f32 %v610_v55, %v606_v32  ;;  %v1531_v57 = vunpack.c.h.bf16 %v1108_v42  ;;  %v1532_v61 = vunpack.c.h.bf16 %v1113_v43  ;;  %v1533_v17 = vunpack.c.h.bf16 %v1122_v48  ;;  %v291_v40 = vpop.f32.mrb[6].mxu0  ;;  %v344_v41 = vpop.f32.mrb[6].mxu1 }
  0xf7   : > { %v378_v6 = vmul.f32 %v1528_v28, %v283_v58  ;;  %v455_v10 = vmul.f32 %v1529_v29, %v283_v58  ;;  %v532_v13 = vmul.f32 %v1530_v30, %v283_v58  ;;  %v1534_v35 = vunpack.c.h.bf16 %v1127_v49  ;;  %v1330_v51 = vpop.f32.mrb[7].mxu0  ;;  %v1332_v52 = vpop.f32.mrb[7].mxu1 }
  0xf8   : > { %v609_v5 = vmul.f32 %v1531_v57, %v283_v58  ;;  %v380_v16 = vmul.f32 %v1532_v61, %v336_v56  ;;  %v457_v31 = vmul.f32 %v1533_v17, %v336_v56  ;;  %v1535_v36 = vunpack.c.h.bf16 %v1132_v50 }
  0xf9   : > { %v534_v32 = vmul.f32 %v1534_v35, %v336_v56  ;;  %v398_v46 = vadd.f32 %v378_v6, %v374_v33  ;;  %v475_v47 = vadd.f32 %v455_v10, %v451_v34  ;;  %v552_v42 = vadd.f32 %v532_v13, %v528_v37 }
  0xfa   : > { %v611_v25 = vmul.f32 %v1535_v36, %v336_v56  ;;  %v629_v58 = vadd.f32 %v609_v5, %v605_v38  ;;  %v416_v43 = vadd.f32 %v380_v16, %v376_v39  ;;  %v493_v53 = vadd.f32 %v457_v31, %v453_v44 }
  0xfb   : > { %v570_v48 = vadd.f32 %v534_v32, %v530_v23  ;;  %v1536_v49 = vunpack.c.l.bf16 %v1145_v59  ;;  %v1537_v50 = vunpack.c.l.bf16 %v1154_v0  ;;  %v1538_v28 = vunpack.c.l.bf16 %v1159_v1 }
  0xfc   : > { %v647_v54 = vadd.f32 %v611_v25, %v607_v24  ;;  %v1539_v10 = vunpack.c.l.bf16 %v1164_v2  ;;  %v1540_v33 = vunpack.c.l.bf16 %v1173_v7  ;;  %v1541_v37 = vunpack.c.l.bf16 %v1178_v8 }
  0xfd   : > { %v381_v55 = vmul.f32 %v1536_v49, %v287_v27  ;;  %v458_v56 = vmul.f32 %v1537_v50, %v287_v27  ;;  %v535_v6 = vmul.f32 %v1538_v28, %v287_v27  ;;  %v1542_v39 = vunpack.c.l.bf16 %v1183_v9 }
  0xfe   : > { %v612_v13 = vmul.f32 %v1539_v10, %v287_v27  ;;  %v383_v34 = vmul.f32 %v1540_v33, %v340_v15  ;;  %v460_v38 = vmul.f32 %v1541_v37, %v340_v15  ;;  %v1543_v23 = vunpack.c.l.bf16 %v1192_v14 }
  0xff   : > { %v537_v44 = vmul.f32 %v1542_v39, %v340_v15  ;;  %v390_v29 = vadd.f32 %v389_v62, %v381_v55  ;;  %v467_v30 = vadd.f32 %v466_v63, %v458_v56  ;;  %v544_v57 = vadd.f32 %v543_v11, %v535_v6  ;;  %v1558_v6 = vld [vmem:[#allocation5_spill] sm:$0xff] }
 0x100   : > { %v614_v24 = vmul.f32 %v1543_v23, %v340_v15  ;;  %v621_v5 = vadd.f32 %v620_v26, %v612_v13  ;;  %v408_v61 = vadd.f32 %v407_v45, %v383_v34  ;;  %v485_v16 = vadd.f32 %v484_v22, %v460_v38  ;;  %v1562_v34 = vld [vmem:[#allocation7_spill] sm:$0xff] }
 0x101   : > { %v562_v17 = vadd.f32 %v561_v21, %v537_v44  ;;  %v1544_v31 = vunpack.c.h.bf16 %v1145_v59  ;;  %v1545_v32 = vunpack.c.h.bf16 %v1154_v0  ;;  %v1546_v25 = vunpack.c.h.bf16 %v1159_v1 }
 0x102   : > { %v639_v27 = vadd.f32 %v638_v60, %v614_v24  ;;  %v1547_v50 = vunpack.c.h.bf16 %v1164_v2  ;;  %v1548_v62 = vunpack.c.h.bf16 %v1173_v7  ;;  %v1549_v11 = vunpack.c.h.bf16 %v1178_v8 }
 0x103   : > { %v382_v35 = vmul.f32 %v1544_v31, %v289_v4  ;;  %v459_v36 = vmul.f32 %v1545_v32, %v289_v4  ;;  %v536_v49 = vmul.f32 %v1546_v25, %v289_v4  ;;  %v1550_v21 = vunpack.c.h.bf16 %v1183_v9 }
 0x104   : > { %v613_v15 = vmul.f32 %v1547_v50, %v289_v4  ;;  %v384_v63 = vmul.f32 %v1548_v62, %v342_v3  ;;  %v461_v22 = vmul.f32 %v1549_v11, %v342_v3  ;;  %v1551_v59 = vunpack.c.h.bf16 %v1192_v14 }
 0x105   : > { %v538_v26 = vmul.f32 %v1550_v21, %v342_v3  ;;  %v399_v0 = vadd.f32 %v398_v46, %v382_v35  ;;  %v476_v60 = vadd.f32 %v475_v47, %v459_v36  ;;  %v1366_v55 = vadd.f32 %v552_v42, %v536_v49 }
 0x106   : > { %v615_v45 = vmul.f32 %v1551_v59, %v342_v3  ;;  %v1368_v1 = vadd.f32 %v629_v58, %v613_v15  ;;  %v1370_v2 = vadd.f32 %v416_v43, %v384_v63  ;;  %v1372_v4 = vadd.f32 %v493_v53, %v461_v22  ;;  %v1556_v43 = vld [vmem:[#allocation4_spill] sm:$0xff] }
 0x107   : > { %v1374_v7 = vadd.f32 %v570_v48, %v538_v26  ;;  %v1552_v9 = vunpack.c.l.bf16 %v1201_v19  ;;  %v1553_v14 = vunpack.c.l.bf16 %v1206_v20  ;;  %v1554_v46 = vunpack.c.l.bf16 %v1215_v18 }
 0x108   : > { %v1376_v8 = vadd.f32 %v647_v54, %v615_v45  ;;  %v1555_v42 = vunpack.c.l.bf16 %v1220_v12  ;;  %v1557_v28 = vunpack.c.l.bf16 %v1556_v43  ;;  %v1559_v48 = vunpack.c.l.bf16 %v1558_v6  ;;  %v1560_v54 = vld [vmem:[#allocation6_spill] sm:$0xff] }
 0x109   : > { %v385_v56 = vmul.f32 %v1552_v9, %v291_v40  ;;  %v462_v3 = vmul.f32 %v1553_v14, %v291_v40  ;;  %v539_v47 = vmul.f32 %v1554_v46, %v291_v40  ;;  %v1561_v13 = vunpack.c.l.bf16 %v1560_v54 }
 0x10a   : > { %v616_v58 = vmul.f32 %v1555_v42, %v291_v40  ;;  %v387_v53 = vmul.f32 %v1557_v28, %v344_v41  ;;  %v464_v10 = vmul.f32 %v1559_v48, %v344_v41  ;;  %v1563_v37 = vunpack.c.l.bf16 %v1562_v34 }
 0x10b   : > { %v541_v33 = vmul.f32 %v1561_v13, %v344_v41  ;;  %v391_v39 = vadd.f32 %v390_v29, %v385_v56  ;;  %v468_v44 = vadd.f32 %v467_v30, %v462_v3  ;;  %v545_v23 = vadd.f32 %v544_v57, %v539_v47 }
 0x10c   : > { %v618_v38 = vmul.f32 %v1563_v37, %v344_v41  ;;  %v622_v24 = vadd.f32 %v621_v5, %v616_v58  ;;  %v409_v31 = vadd.f32 %v408_v61, %v387_v53  ;;  %v486_v35 = vadd.f32 %v485_v16, %v464_v10 }
 0x10d   : > { %v563_v32 = vadd.f32 %v562_v17, %v541_v33  ;;  %v392_v36 = vrot.slane %v391_v39, 4  ;;  %v469_v25 = vrot.slane %v468_v44, 4  ;;  %v546_v49 = vrot.slane %v545_v23, 4 }
 0x10e   : > { %v640_v40 = vadd.f32 %v639_v27, %v618_v38  ;;  %v623_v50 = vrot.slane %v622_v24, 4  ;;  %v410_v15 = vrot.slane %v409_v31, 4  ;;  %v487_v62 = vrot.slane %v486_v35, 4 }
 0x10f   : > { %v564_v63 = vrot.slane %v563_v32, 4  ;;  %v393_v22 = vadd.f32 %v392_v36, %v391_v39  ;;  %v470_v21 = vadd.f32 %v469_v25, %v468_v44  ;;  %v547_v26 = vadd.f32 %v546_v49, %v545_v23 }
 0x110   : > { %v641_v11 = vrot.slane %v640_v40, 4  ;;  %v1394_v41 = vadd.f32 %v623_v50, %v622_v24  ;;  %v411_v29 = vadd.f32 %v410_v15, %v409_v31  ;;  %v488_v30 = vadd.f32 %v487_v62, %v486_v35 }
 0x111   : > { %v565_v57 = vadd.f32 %v564_v63, %v563_v32  ;;  %v394_v61 = vrot.slane %v393_v22, 2  ;;  %v471_v16 = vrot.slane %v470_v21, 2  ;;  %v548_v17 = vrot.slane %v547_v26, 2 }
 0x112   : > { %v1396_v5 = vadd.f32 %v641_v11, %v640_v40  ;;  %v625_v27 = vrot.slane %v1394_v41, 2  ;;  %v412_v59 = vrot.slane %v411_v29, 2  ;;  %v489_v45 = vrot.slane %v488_v30, 2 }
 0x113   : > { %v566_v9 = vrot.slane %v565_v57, 2  ;;  %v1400_v14 = vadd.f32 %v394_v61, %v393_v22  ;;  %v1402_v3 = vadd.f32 %v471_v16, %v470_v21  ;;  %v1404_v46 = vadd.f32 %v548_v17, %v547_v26 }
 0x114   : > { %v643_v56 = vrot.slane %v1396_v5, 2  ;;  %v1564_v47 = vunpack.c.h.bf16 %v1201_v19  ;;  %v1409_v58 = vadd.f32 %v412_v59, %v411_v29  ;;  %v1411_v28 = vadd.f32 %v489_v45, %v488_v30 }
 0x115   : > { %v1413_v53 = vadd.f32 %v566_v9, %v565_v57  ;;  %v1565_v48 = vunpack.c.h.bf16 %v1206_v20  ;;  %v396_v13 = vrot.slane %v1400_v14, 1  ;;  %v473_v33 = vrot.slane %v1402_v3, 1 }
 0x116   : > { %v386_v42 = vmul.f32 %v1564_v47, %v1330_v51  ;;  %v1566_v38 = vunpack.c.h.bf16 %v1215_v18  ;;  %v414_v39 = vrot.slane %v1409_v58, 1  ;;  %v491_v44 = vrot.slane %v1411_v28, 1 }
 0x117   : > { %v463_v10 = vmul.f32 %v1565_v48, %v1330_v51  ;;  %v1567_v24 = vunpack.c.h.bf16 %v1220_v12  ;;  %v1568_v32 = vunpack.c.h.bf16 %v1556_v43  ;;  %v1569_v18 = vunpack.c.h.bf16 %v1558_v6 }
 0x118   : > { %v400_v37 = vadd.f32 %v399_v0, %v386_v42  ;;  %v540_v19 = vmul.f32 %v1566_v38, %v1330_v51  ;;  %v1571_v12 = vunpack.c.h.bf16 %v1562_v34 }
 0x119   : > { %v477_v23 = vadd.f32 %v476_v60, %v463_v10  ;;  %v617_v31 = vmul.f32 %v1567_v24, %v1330_v51  ;;  %v388_v0 = vmul.f32 %v1568_v32, %v1332_v52  ;;  %v465_v40 = vmul.f32 %v1569_v18, %v1332_v52 }
 0x11a   : > { %v401_v20 = vrot.slane %v400_v37, 4  ;;  %v554_v35 = vadd.f32 %v1366_v55, %v540_v19  ;;  %v1570_v60 = vunpack.c.h.bf16 %v1560_v54  ;;  %v619_v51 = vmul.f32 %v1571_v12, %v1332_v52 }
 0x11b   : > { %v478_v36 = vrot.slane %v477_v23, 4  ;;  %v631_v25 = vadd.f32 %v1368_v1, %v617_v31  ;;  %v418_v43 = vadd.f32 %v1370_v2, %v388_v0  ;;  %v495_v15 = vadd.f32 %v1372_v4, %v465_v40 }
 0x11c   : > { %v542_v49 = vmul.f32 %v1570_v60, %v1332_v52  ;;  %v402_v55 = vadd.f32 %v401_v20, %v400_v37  ;;  %v555_v50 = vrot.slane %v554_v35, 4  ;;  %v649_v1 = vadd.f32 %v1376_v8, %v619_v51 }
 0x11d   : > { %v479_v6 = vadd.f32 %v478_v36, %v477_v23  ;;  %v632_v62 = vrot.slane %v631_v25, 4  ;;  %v419_v22 = vrot.slane %v418_v43, 4  ;;  %v496_v21 = vrot.slane %v495_v15, 4 }
 0x11e   : > { %v572_v63 = vadd.f32 %v1374_v7, %v542_v49  ;;  %v403_v54 = vrot.slane %v402_v55, 2  ;;  %v556_v11 = vadd.f32 %v555_v50, %v554_v35  ;;  %v650_v29 = vrot.slane %v649_v1, 4 }
 0x11f   : > { %v480_v52 = vrot.slane %v479_v6, 2  ;;  %v633_v34 = vadd.f32 %v632_v62, %v631_v25  ;;  %v420_v4 = vadd.f32 %v419_v22, %v418_v43  ;;  %v497_v57 = vadd.f32 %v496_v21, %v495_v15 }
 0x120   : > { %v573_v26 = vrot.slane %v572_v63, 4  ;;  %v404_v2 = vadd.f32 %v403_v54, %v402_v55  ;;  %v557_v30 = vrot.slane %v556_v11, 2  ;;  %v651_v17 = vadd.f32 %v650_v29, %v649_v1 }
 0x121   : > { %v481_v61 = vadd.f32 %v480_v52, %v479_v6  ;;  %v634_v7 = vrot.slane %v633_v34, 2  ;;  %v421_v59 = vrot.slane %v420_v4, 2  ;;  %v498_v8 = vrot.slane %v497_v57, 2 }
 0x122   : > { %v574_v16 = vadd.f32 %v573_v26, %v572_v63  ;;  %v405_v45 = vrot.slane %v404_v2, 1  ;;  %v558_v9 = vadd.f32 %v557_v30, %v556_v11  ;;  %v652_v10 = vrot.slane %v651_v17, 2 }
 0x123   : > { %v482_v42 = vrot.slane %v481_v61, 1  ;;  %v635_v48 = vadd.f32 %v634_v7, %v633_v34  ;;  %v422_v37 = vadd.f32 %v421_v59, %v420_v4  ;;  %v499_v38 = vadd.f32 %v498_v8, %v497_v57 }
 0x124   : > { %v575_v47 = vrot.slane %v574_v16, 2  ;;  %v406_v19 = vadd.f32 %v405_v45, %v404_v2  ;;  %v559_v23 = vrot.slane %v558_v9, 1  ;;  %v653_v35 = vadd.f32 %v652_v10, %v651_v17 }
 0x125   : > { %v483_v24 = vadd.f32 %v482_v42, %v481_v61  ;;  %v636_v31 = vrot.slane %v635_v48, 1  ;;  %v423_v0 = vrot.slane %v422_v37, 1  ;;  %v500_v18 = vrot.slane %v499_v38, 1 }
 0x126   : > { %v576_v20 = vadd.f32 %v575_v47, %v574_v16  ;;  %v560_v32 = vadd.f32 %v559_v23, %v558_v9  ;;  %v397_v40 = vadd.f32 %v396_v13, %v1400_v14  ;;  %v654_v49 = vrot.slane %v653_v35, 1 }
 0x127   : > { %v637_v36 = vadd.f32 %v636_v31, %v635_v48  ;;  %v658_v25 = vsel %vm656_vm14, %v406_v19, %v483_v24  ;;  %v424_v51 = vadd.f32 %v423_v0, %v422_v37  ;;  %v501_v55 = vadd.f32 %v500_v18, %v499_v38 }
 0x128   : > { %v577_v60 = vrot.slane %v576_v20, 1  ;;  %v663_v12 = vsel %vm661_vm15, %v658_v25, %v560_v32  ;;  %v474_v50 = vadd.f32 %v473_v33, %v1402_v3  ;;  %v655_v6 = vadd.f32 %v654_v49, %v653_v35 }
 0x129   : > { %v668_v43 = vsel %vm666_vm0, %v663_v12, %v637_v36  ;;  %v550_v62 = vrot.slane %v1404_v46, 1  ;;  %v660_v14 = vsel %vm656_vm14, %v424_v51, %v501_v55  ;;  %v626_v13 = vadd.f32 %v625_v27, %v1394_v41 }
 0x12a   : > { %v578_v15 = vadd.f32 %v577_v60, %v576_v20  ;;  %708 = vmatprep.subr.mxu1 %v668_v43  ;;  %v657_v63 = vsel %vm656_vm14, %v397_v40, %v474_v50  ;;  %v415_v1 = vadd.f32 %v414_v39, %v1409_v58  ;;  %v492_v54 = vadd.f32 %v491_v44, %v1411_v28 }
 0x12b   : > { %v551_v33 = vadd.f32 %v550_v62, %v1404_v46  ;;  %v568_v11 = vrot.slane %v1413_v53, 1  ;;  %v627_v21 = vrot.slane %v626_v13, 1  ;;  %v644_v41 = vadd.f32 %v643_v56, %v1396_v5 }
 0x12c   : > { %v665_v3 = vsel %vm661_vm15, %v660_v14, %v578_v15  ;;  %v659_v46 = vsel %vm656_vm14, %v415_v1, %v492_v54  ;;  %v1572_v5 = vmov 1.0  }
 0x12d   : > { %v670_v22 = vsel %vm666_vm0, %v665_v3, %v655_v6  ;;  %v662_v27 = vsel %vm661_vm15, %v657_v63, %v551_v33  ;;  %v569_v58 = vadd.f32 %v568_v11, %v1413_v53  ;;  %v628_v39 = vadd.f32 %v627_v21, %v626_v13  ;;  %v951_v53 = vld [vmem:[%s1497_s3] ss:$0 sm:$0xff] }
 0x12e   : > { %778 = vmatprep.subr.mxu0 %v670_v22  ;;  %v645_v52 = vrot.slane %v644_v41, 1 }
 0x12f   : > { %v664_v28 = vsel %vm661_vm15, %v659_v46, %v569_v58  ;;  %v667_v44 = vsel %vm666_vm0, %v662_v27, %v628_v39 }
 0x130   : > { %v646_v34 = vadd.f32 %v645_v52, %v644_v41  ;;  %709 = vmatpush1.xpose.msra.mxu1 %v667_v44 }
 0x132   : > { %v669_v26 = vsel %vm666_vm0, %v664_v28, %v646_v34 }
 0x133   : > { %779 = vmatpush1.xpose.msra.mxu0 %v669_v26  ;;  %953 = vmatmul.mubr.msk.f32.vlgmr.msra.gmra.mrb[8].mxu1 %vm1033_vm11, %v1572_v5 }
 0x136   : > { %955 = vmatmul.mubr.msk.f32.vlgmr.msra.gmra.mrb[8].mxu0 %vm1038_vm13, %v1572_v5 }
 0x206   : > { %v774_v2 = vpop.f32.mrb[8].mxu1 }
 0x207   : > { %v775_v30 = vadd.f32 %v951_v53, %v774_v2  ;;  %v776_v4 = vpop.f32.mrb[9].mxu1 }
 0x209   : > { %v844_v57 = vpop.f32.mrb[8].mxu0 }
 0x20a   : > { %v845_v61 = vadd.f32 %v844_v57, %v775_v30  ;;  %v846_v16 = vpop.f32.mrb[9].mxu0 }
 0x20c   : > { %849 = vst.msk [vmem:[%s195_s22] sm:$0xff] %vm848_vm1, %v845_v61 }
 0x20d PF: > { %s14_s15 = sadd.s32 1, %s983_s15  }
 0x20e   : > { %p11_p4 = scmp.ge.s32.totalorder %s14_s15, 4  }
 0x210   :  { %13 = sbr.rel (!%p11_p4) target bundleno = 1 (0x1), region = 69 }

</bundles_post_ra>
